<compile_context>
chip_gen: v7x
topology: tpu7x:2x2x1
jax: 0.10.0
libtpu: 0.0.40
codegen_flags: <defaults>
</compile_context>

<pallas_src>
import jax
import jax.numpy as jnp
from jax.experimental import pallas as pl
from jax.experimental.pallas import tpu as pltpu

INPUT_SIZE = 70
H1 = 128
H2 = 64
OUTPUT_SIZE = 8

# Approx. per-row VMEM cost (bytes): 2x f32 x tile (double-buffered) + 2x f32
# out tile + f32 h1/h2 temporaries + bf16 casts of x/h1/h2.  Rounded up.
_BYTES_PER_ROW = 2048
# Conservative scoped-VMEM budget that fits every generation's default
# (v5e: 16 MiB, v6e: 32 MiB, v7x: 32 MiB scoped / 64 MiB physical).
_DEFAULT_VMEM_BUDGET = 12 << 20


def mlp_kernel(x_ref, w1_ref, b1_ref, w2_ref, b2_ref, w3_ref, b3_ref, o_ref):
    # In-kernel f32 -> bf16 cast of the streamed activation (VPU, in-register).
    x = x_ref[...].astype(jnp.bfloat16)
    # Layer 1: bf16 x bf16 MXU dot with f32 accumulation, f32 bias + ReLU.
    h1 = jnp.dot(x, w1_ref[...], preferred_element_type=jnp.float32)
    h1 = jnp.maximum(h1 + b1_ref[...], 0.0)
    # Layer 2.
    h2 = jnp.dot(h1.astype(jnp.bfloat16), w2_ref[...],
                 preferred_element_type=jnp.float32)
    h2 = jnp.maximum(h2 + b2_ref[...], 0.0)
    # Dropout(0.1): identity at inference time.
    # TODO(synk): training-mode dropout (pltpu.prng_* mask + 1/(1-p) scale) not implemented.
    # Layer 3.
    out = jnp.dot(h2.astype(jnp.bfloat16), w3_ref[...],
                  preferred_element_type=jnp.float32)
    o_ref[...] = (out + b3_ref[...]).astype(o_ref.dtype)


def _num_tensorcores_per_chip():
    """v7x has 2 TensorCores per chip; v5e/v6e have 1."""
    try:
        kind = (getattr(jax.devices()[0], "device_kind", "") or "").lower()
        if "v7" in kind:
            return 2
    except Exception:
        pass
    return 1


def _vmem_row_budget():
    budget = _DEFAULT_VMEM_BUDGET
    try:
        phys = pltpu.get_tpu_info().vmem_capacity_bytes
        budget = min(budget, phys // 4)
    except Exception:
        pass
    return max(budget // _BYTES_PER_ROW, 8)


def _pick_batch_tile(B):
    """Fewest grid steps whose tile fits VMEM; even step count on 2-TC chips."""
    max_rows = _vmem_row_budget()
    num_tc = _num_tensorcores_per_chip()
    if num_tc >= 2:
        # Largest tile with an even number of steps (each TC gets half the grid).
        for steps in range(2, B + 1, 2):
            if B % steps == 0 and B // steps <= max_rows:
                return B // steps
        # No even split (e.g. odd B): fall through to single-TC rule.
    for steps in range(1, B + 1):
        if B % steps == 0 and B // steps <= max_rows:
            return B // steps
    return 1


def mlp_forward(x, params, *, batch_tile=None):
    w1, b1, w2, b2, w3, b3 = params
    B, F = x.shape
    assert F == INPUT_SIZE
    if batch_tile is None:
        batch_tile = _pick_batch_tile(B)
    assert B % batch_tile == 0, "batch must be divisible by batch_tile"
    grid = (B // batch_tile,)

    # Weights are already bf16 (cast once at init); biases are f32 and added
    # after the f32 accumulator.  No per-call casts here.
    in_specs = [
        pl.BlockSpec((batch_tile, INPUT_SIZE), lambda i: (i, 0)),   # x tile (f32)
        pl.BlockSpec((INPUT_SIZE, H1), lambda i: (0, 0)),           # w1 (resident)
        pl.BlockSpec((1, H1), lambda i: (0, 0)),                    # b1
        pl.BlockSpec((H1, H2), lambda i: (0, 0)),                   # w2
        pl.BlockSpec((1, H2), lambda i: (0, 0)),                    # b2
        pl.BlockSpec((H2, OUTPUT_SIZE), lambda i: (0, 0)),          # w3
        pl.BlockSpec((1, OUTPUT_SIZE), lambda i: (0, 0)),           # b3
    ]
    out_specs = pl.BlockSpec((batch_tile, OUTPUT_SIZE), lambda i: (i, 0))

    flops = 2 * B * (INPUT_SIZE * H1 + H1 * H2 + H2 * OUTPUT_SIZE)
    bytes_accessed = (
        B * INPUT_SIZE * 4                                    # f32 x stream
        + B * OUTPUT_SIZE * 4                                 # f32 output
        + 2 * (INPUT_SIZE * H1 + H1 * H2 + H2 * OUTPUT_SIZE)  # bf16 weights (once)
        + 4 * (H1 + H2 + OUTPUT_SIZE)                         # f32 biases (once)
    )
    cost = pl.CostEstimate(flops=flops, transcendentals=0,
                           bytes_accessed=bytes_accessed)

    return pl.pallas_call(
        mlp_kernel,
        out_shape=jax.ShapeDtypeStruct((B, OUTPUT_SIZE), jnp.float32),
        grid_spec=pltpu.PrefetchScalarGridSpec(
            num_scalar_prefetch=0,
            grid=grid,
            in_specs=in_specs,
            out_specs=out_specs,
        ),
        compiler_params=pltpu.CompilerParams(
            dimension_semantics=("parallel",),
        ),
        cost_estimate=cost,
    )(x, w1, b1, w2, b2, w3, b3)


def init_params(key):
    # PyTorch-Linear-style uniform init U(-1/sqrt(fan_in), 1/sqrt(fan_in)).
    # Weights are cast to bf16 ONCE here and kept bf16 (no per-forward casts).
    ks = jax.random.split(key, 6)

    def linear(kw, kb, fan_in, fan_out):
        bound = 1.0 / jnp.sqrt(fan_in)
        w = jax.random.uniform(kw, (fan_in, fan_out), jnp.float32, -bound, bound)
        b = jax.random.uniform(kb, (1, fan_out), jnp.float32, -bound, bound)
        return w.astype(jnp.bfloat16), b

    w1, b1 = linear(ks[0], ks[1], INPUT_SIZE, H1)
    w2, b2 = linear(ks[2], ks[3], H1, H2)
    w3, b3 = linear(ks[4], ks[5], H2, OUTPUT_SIZE)
    return (w1, b1, w2, b2, w3, b3)


def mlp_reference(x, params):
    # Mirrors the kernel's math exactly: bf16 operands, f32 accumulation.
    w1, b1, w2, b2, w3, b3 = params
    xb = x.astype(jnp.bfloat16)
    h1 = jnp.maximum(
        jnp.dot(xb, w1, preferred_element_type=jnp.float32) + b1, 0.0)
    h2 = jnp.maximum(
        jnp.dot(h1.astype(jnp.bfloat16), w2,
                preferred_element_type=jnp.float32) + b2, 0.0)
    return jnp.dot(h2.astype(jnp.bfloat16), w3,
                   preferred_element_type=jnp.float32) + b3


if __name__ == "__main__":
    key = jax.random.PRNGKey(0)
    k_x, k_p = jax.random.split(key)

    B = 512  # 1 grid step on v5e/v6e; 2 x 256-row "parallel" steps on v7x
    x = jax.random.normal(k_x, (B, INPUT_SIZE), jnp.float32)
    params = init_params(k_p)

    out = mlp_forward(x, params)
    out = jax.block_until_ready(out)

    ref = mlp_reference(x, params)
    assert out.shape == (B, OUTPUT_SIZE)
    assert jnp.allclose(out, ref, atol=1e-2, rtol=1e-2), "mismatch vs reference"

    print("KERNEL_OK")
</pallas_src>

<mosaic_0001>
module attributes {stable_mosaic.version = 11 : i64} {
  func.func @mlp_kernel(%arg0: i32, %arg1: memref<512x70xf32, #tpu.memory_space<vmem>>, %arg2: memref<70x128xbf16, #tpu.memory_space<vmem>>, %arg3: memref<1x128xf32, #tpu.memory_space<vmem>>, %arg4: memref<128x64xbf16, #tpu.memory_space<vmem>>, %arg5: memref<1x64xf32, #tpu.memory_space<vmem>>, %arg6: memref<64x8xbf16, #tpu.memory_space<vmem>>, %arg7: memref<1x8xf32, #tpu.memory_space<vmem>>, %arg8: memref<512x8xf32, #tpu.memory_space<vmem>>) attributes {dimension_semantics = [#tpu.dimension_semantics<parallel>], iteration_bounds = array<i64: 1>, scalar_prefetch = 0 : i64, scratch_operands = 0 : i64, tpu.core_type = #tpu.core_type<tc>, window_params = [{transform_indices = @transform_0, window_bounds = array<i64: 512, 70>}, {pipeline_mode = #tpu.pipeline_mode<synchronous>, transform_indices = @transform_1, window_bounds = array<i64: 70, 128>}, {pipeline_mode = #tpu.pipeline_mode<synchronous>, transform_indices = @transform_2, window_bounds = array<i64: 1, 128>}, {pipeline_mode = #tpu.pipeline_mode<synchronous>, transform_indices = @transform_3, window_bounds = array<i64: 128, 64>}, {pipeline_mode = #tpu.pipeline_mode<synchronous>, transform_indices = @transform_4, window_bounds = array<i64: 1, 64>}, {pipeline_mode = #tpu.pipeline_mode<synchronous>, transform_indices = @transform_5, window_bounds = array<i64: 64, 8>}, {pipeline_mode = #tpu.pipeline_mode<synchronous>, transform_indices = @transform_6, window_bounds = array<i64: 1, 8>}, {transform_indices = @transform_7, window_bounds = array<i64: 512, 8>}]} {
    %c0 = arith.constant 0 : index
    %c0_0 = arith.constant 0 : index
    %0 = vector.load %arg1[%c0, %c0_0] : memref<512x70xf32, #tpu.memory_space<vmem>>, vector<512x70xf32>
    %1 = arith.truncf %0 : vector<512x70xf32> to vector<512x70xbf16>
    %c0_1 = arith.constant 0 : index
    %c0_2 = arith.constant 0 : index
    %2 = vector.load %arg2[%c0_1, %c0_2] : memref<70x128xbf16, #tpu.memory_space<vmem>>, vector<70x128xbf16>
    %cst = arith.constant dense<0.000000e+00> : vector<512x128xf32>
    %3 = tpu.matmul %1, %2, %cst {dimension_numbers = #tpu.dot_dimension_numbers<[1], [0], [0], [1], [0, 0, 1, 1], [], []>} : vector<512x70xbf16>, vector<70x128xbf16>, vector<512x128xf32> -> vector<512x128xf32>
    %c0_3 = arith.constant 0 : index
    %c0_4 = arith.constant 0 : index
    %4 = vector.load %arg3[%c0_3, %c0_4] : memref<1x128xf32, #tpu.memory_space<vmem>>, vector<1x128xf32>
    %5 = vector.broadcast %4 : vector<1x128xf32> to vector<512x128xf32>
    %6 = arith.addf %3, %5 : vector<512x128xf32>
    %cst_5 = arith.constant 0.000000e+00 : f32
    %7 = vector.broadcast %cst_5 : f32 to vector<512x128xf32>
    %8 = arith.maximumf %6, %7 : vector<512x128xf32>
    %9 = arith.truncf %8 : vector<512x128xf32> to vector<512x128xbf16>
    %c0_6 = arith.constant 0 : index
    %c0_7 = arith.constant 0 : index
    %10 = vector.load %arg4[%c0_6, %c0_7] : memref<128x64xbf16, #tpu.memory_space<vmem>>, vector<128x64xbf16>
    %cst_8 = arith.constant dense<0.000000e+00> : vector<512x64xf32>
    %11 = tpu.matmul %9, %10, %cst_8 {dimension_numbers = #tpu.dot_dimension_numbers<[1], [0], [0], [1], [0, 0, 1, 1], [], []>} : vector<512x128xbf16>, vector<128x64xbf16>, vector<512x64xf32> -> vector<512x64xf32>
    %c0_9 = arith.constant 0 : index
    %c0_10 = arith.constant 0 : index
    %12 = vector.load %arg5[%c0_9, %c0_10] : memref<1x64xf32, #tpu.memory_space<vmem>>, vector<1x64xf32>
    %13 = vector.broadcast %12 : vector<1x64xf32> to vector<512x64xf32>
    %14 = arith.addf %11, %13 : vector<512x64xf32>
    %cst_11 = arith.constant 0.000000e+00 : f32
    %15 = vector.broadcast %cst_11 : f32 to vector<512x64xf32>
    %16 = arith.maximumf %14, %15 : vector<512x64xf32>
    %17 = arith.truncf %16 : vector<512x64xf32> to vector<512x64xbf16>
    %c0_12 = arith.constant 0 : index
    %c0_13 = arith.constant 0 : index
    %18 = vector.load %arg6[%c0_12, %c0_13] : memref<64x8xbf16, #tpu.memory_space<vmem>>, vector<64x8xbf16>
    %cst_14 = arith.constant dense<0.000000e+00> : vector<512x8xf32>
    %19 = tpu.matmul %17, %18, %cst_14 {dimension_numbers = #tpu.dot_dimension_numbers<[1], [0], [0], [1], [0, 0, 1, 1], [], []>} : vector<512x64xbf16>, vector<64x8xbf16>, vector<512x8xf32> -> vector<512x8xf32>
    %c0_15 = arith.constant 0 : index
    %c0_16 = arith.constant 0 : index
    %20 = vector.load %arg7[%c0_15, %c0_16] : memref<1x8xf32, #tpu.memory_space<vmem>>, vector<1x8xf32>
    %21 = vector.broadcast %20 : vector<1x8xf32> to vector<512x8xf32>
    %22 = arith.addf %19, %21 : vector<512x8xf32>
    %c0_17 = arith.constant 0 : index
    %c0_18 = arith.constant 0 : index
    %23 = vector.load %arg8[%c0_17, %c0_18] : memref<512x8xf32, #tpu.memory_space<vmem>>, vector<512x8xf32>
    tpu.vector_store %arg8[%c0_17, %c0_18], %22 {strides = array<i32>} : memref<512x8xf32, #tpu.memory_space<vmem>>, vector<512x8xf32>,
    return
  }
  func.func @transform_0(%arg0: i32) -> (i32, i32) {
    %c0_i32 = arith.constant 0 : i32
    %c0_i32_0 = arith.constant 0 : i32
    return %arg0, %c0_i32 : i32, i32
  }
  func.func @transform_1(%arg0: i32) -> (i32, i32) {
    %c0_i32 = arith.constant 0 : i32
    %c0_i32_0 = arith.constant 0 : i32
    %c0_i32_1 = arith.constant 0 : i32
    return %c0_i32, %c0_i32_0 : i32, i32
  }
  func.func @transform_2(%arg0: i32) -> (i32, i32) {
    %c0_i32 = arith.constant 0 : i32
    %c0_i32_0 = arith.constant 0 : i32
    %c0_i32_1 = arith.constant 0 : i32
    return %c0_i32, %c0_i32_0 : i32, i32
  }
  func.func @transform_3(%arg0: i32) -> (i32, i32) {
    %c0_i32 = arith.constant 0 : i32
    %c0_i32_0 = arith.constant 0 : i32
    %c0_i32_1 = arith.constant 0 : i32
    return %c0_i32, %c0_i32_0 : i32, i32
  }
  func.func @transform_4(%arg0: i32) -> (i32, i32) {
    %c0_i32 = arith.constant 0 : i32
    %c0_i32_0 = arith.constant 0 : i32
    %c0_i32_1 = arith.constant 0 : i32
    return %c0_i32, %c0_i32_0 : i32, i32
  }
  func.func @transform_5(%arg0: i32) -> (i32, i32) {
    %c0_i32 = arith.constant 0 : i32
    %c0_i32_0 = arith.constant 0 : i32
    %c0_i32_1 = arith.constant 0 : i32
    return %c0_i32, %c0_i32_0 : i32, i32
  }
  func.func @transform_6(%arg0: i32) -> (i32, i32) {
    %c0_i32 = arith.constant 0 : i32
    %c0_i32_0 = arith.constant 0 : i32
    %c0_i32_1 = arith.constant 0 : i32
    return %c0_i32, %c0_i32_0 : i32, i32
  }
  func.func @transform_7(%arg0: i32) -> (i32, i32) {
    %c0_i32 = arith.constant 0 : i32
    %c0_i32_0 = arith.constant 0 : i32
    return %arg0, %c0_i32 : i32, i32
  }
}

</mosaic_0001>

<bundles_post_ra>
// kernel: tpu_custom_call.1
= control target key start
LH: loop header
LB: loop body
LE: loop exit
PB: predicated region body
PF: predicated region fallthrough
CT: control target
= control target key end

     0   :  { %vm166_vm0 = vcmask 572416   ;;  %vm263_vm1 = vcmask 1042432   ;;  %vm1147_vm2 = vcmask 523264   ;;  %vm1533_vm3 = vcmask 64512   ;;  %s2900_s1 = inlined_call_operand.vmem [shape: bf16[70,128], index: 1, kind: input, shape index: {}]   ;;  %s2901_s0 = inlined_call_operand.vmem [shape: f32[512,70], index: 0, kind: input, shape index: {}]   ;;  %s2902_s3 = inlined_call_operand.vmem [shape: bf16[128,64], index: 3, kind: input, shape index: {}]   ;;  %s2903_s2 = inlined_call_operand.vmem [shape: f32[1,128], index: 2, kind: input, shape index: {}]   ;;  %s2904_s5 = inlined_call_operand.vmem [shape: bf16[64,8], index: 5, kind: input, shape index: {}]   ;;  %s2905_s4 = inlined_call_operand.vmem [shape: f32[1,64], index: 4, kind: input, shape index: {}]   ;;  %s2906_s6 = inlined_call_operand.vmem [shape: f32[1,8], index: 6, kind: input, shape index: {}]   ;;  %s2907_s7 = inlined_call_operand.vmem [shape: f32[512,8], index: 7, kind: output, shape index: {}]  }
   0x1   :  { %v2037_v0 = vld [vmem:[%s2900_s1] sm:$0xff]   ;;  %v2038_v1 = vld [vmem:[%s2900_s1 + $0x8] sm:$0xff]   ;;  %v2039_v2 = vld [vmem:[%s2900_s1 + $0x10] sm:$0xff]  }
   0x2   :  { %1799 = vmatprep.subr.bf16.mxu0 %v2037_v0  ;;  %2025 = vmatprep.subr.bf16.mxu1 %v2037_v0  ;;  %v27_v3 = vld [vmem:[%s2901_s0] sm:$0xff]  ;;  %v28_v4 = vld [vmem:[%s2901_s0 + $0x8] sm:$0xff]  ;;  %v2040_v6 = vld [vmem:[%s2900_s1 + $0x18] sm:$0xff]  }
   0x3   :  { %1800 = vmatpush3.bf16.msra.mxu0 %v2037_v0  ;;  %2030 = vmatpush3.bf16.msra.mxu1 %v2037_v0  ;;  %v91_v5 = vpack.c.bf16 %v28_v4, %v27_v3  ;;  %v2041_v7 = vld [vmem:[%s2900_s1 + $0x20] ss:$0 sps:$4 sm:$0x77]   ;;  %v29_v8 = vld [vmem:[%s2901_s0 + $0x10] sm:$0xff]  ;;  %v30_v9 = vld [vmem:[%s2901_s0 + $0x18] sm:$0xff] }
   0x4   :  { %1801 = vmatprep.subr.bf16.mxu0 %v2038_v1  ;;  %2026 = vmatprep.subr.bf16.mxu1 %v2038_v1  ;;  %v31_v10 = vld [vmem:[%s2901_s0 + $0x20] sm:$0xff]  ;;  %v32_v11 = vld [vmem:[%s2901_s0 + $0x28] sm:$0xff]  ;;  %v265_v14 = vsel %vm263_vm1, %v2041_v7, 0  ;;  %v61_v16 = vld [vmem:[%s2901_s0 + $0x110] sm:$0xff]  ;;  %v92_v20 = vpack.c.bf16 %v30_v9, %v29_v8 }
   0x5   :  { %1809 = vmatprep.mubr.msk.bf16.mxu0 %vm166_vm0, %v91_v5  ;;  %v59_v12 = vld [vmem:[%s2901_s0 + $0x100] sm:$0xff]  ;;  %v60_v13 = vld [vmem:[%s2901_s0 + $0x108] sm:$0xff]  ;;  %v62_v17 = vld [vmem:[%s2901_s0 + $0x118] sm:$0xff]  ;;  %v93_v22 = vpack.c.bf16 %v32_v11, %v31_v10 }
   0x6   :  { %v107_v15 = vpack.c.bf16 %v60_v13, %v59_v12  ;;  %v63_v18 = vld [vmem:[%s2901_s0 + $0x120] sm:$0xff]  ;;  %v64_v19 = vld [vmem:[%s2901_s0 + $0x128] sm:$0xff]  ;;  %v108_v21 = vpack.c.bf16 %v62_v17, %v61_v16  ;;  %v33_v24 = vld [vmem:[%s2901_s0 + $0x30] sm:$0xff] }
   0x7   :  { %1802 = vmatpush3.bf16.msra.mxu0 %v2038_v1  ;;  %2031 = vmatpush3.bf16.msra.mxu1 %v2038_v1  ;;  %v109_v23 = vpack.c.bf16 %v64_v19, %v63_v18  ;;  %v34_v25 = vld [vmem:[%s2901_s0 + $0x38] sm:$0xff]  ;;  %v35_v26 = vld [vmem:[%s2901_s0 + $0x40] sm:$0xff]  ;;  %v65_v27 = vld [vmem:[%s2901_s0 + $0x130] sm:$0xff] }
   0x8   :  { %1803 = vmatprep.subr.bf16.mxu0 %v2039_v2  ;;  %2027 = vmatprep.subr.bf16.mxu1 %v2039_v2  ;;  %v66_v28 = vld [vmem:[%s2901_s0 + $0x138] sm:$0xff]  ;;  %v36_v29 = vld [vmem:[%s2901_s0 + $0x48] sm:$0xff]  ;;  %v67_v30 = vld [vmem:[%s2901_s0 + $0x140] sm:$0xff]  ;;  %v94_v32 = vpack.c.bf16 %v34_v25, %v33_v24 }
   0x9   :  { %1841 = vmatprep.mubr.msk.bf16.mxu1 %vm166_vm0, %v107_v15  ;;  %v68_v31 = vld [vmem:[%s2901_s0 + $0x148] sm:$0xff]  ;;  %v110_v33 = vpack.c.bf16 %v66_v28, %v65_v27  ;;  %v2042_v34 = vld [vmem:[%s2902_s3] sm:$0xff]   ;;  %v95_v35 = vpack.c.bf16 %v36_v29, %v35_v26  ;;  %v37_v38 = vld [vmem:[%s2901_s0 + $0x50] sm:$0xff] }
   0xa   :  { %v111_v36 = vpack.c.bf16 %v68_v31, %v67_v30  ;;  %v2043_v37 = vld [vmem:[%s2902_s3 + $0x8] sm:$0xff]   ;;  %v38_v39 = vld [vmem:[%s2901_s0 + $0x58] sm:$0xff]  ;;  %v69_v40 = vld [vmem:[%s2901_s0 + $0x150] sm:$0xff] }
   0xb   :  { %1804 = vmatpush3.bf16.msra.mxu0 %v2039_v2  ;;  %2032 = vmatpush3.bf16.msra.mxu1 %v2039_v2  ;;  %v70_v41 = vld [vmem:[%s2901_s0 + $0x158] sm:$0xff]  ;;  %v39_v42 = vld [vmem:[%s2901_s0 + $0x60] sm:$0xff]  ;;  %v40_v43 = vld [vmem:[%s2901_s0 + $0x68] sm:$0xff]  ;;  %v96_v47 = vpack.c.bf16 %v38_v39, %v37_v38 }
   0xc   :  { %1805 = vmatprep.subr.bf16.mxu0 %v2040_v6  ;;  %2028 = vmatprep.subr.bf16.mxu1 %v2040_v6  ;;  %v2044_v44 = vld [vmem:[%s2902_s3 + $0x10] sm:$0xff]   ;;  %v71_v45 = vld [vmem:[%s2901_s0 + $0x160] sm:$0xff]  ;;  %v72_v46 = vld [vmem:[%s2901_s0 + $0x168] sm:$0xff]  ;;  %v112_v48 = vpack.c.bf16 %v70_v41, %v69_v40  ;;  %v97_v49 = vpack.c.bf16 %v40_v43, %v39_v42 }
   0xd   :  { %v113_v50 = vpack.c.bf16 %v72_v46, %v71_v45  ;;  %v2045_v51 = vld [vmem:[%s2902_s3 + $0x18] sm:$0xff]   ;;  %v41_v52 = vld [vmem:[%s2901_s0 + $0x70] sm:$0xff]  ;;  %v2046_v54 = vld [vmem:[%s2902_s3 + $0x20] sm:$0xff]  }
   0xe   :  { %v42_v53 = vld [vmem:[%s2901_s0 + $0x78] sm:$0xff]  ;;  %v43_v55 = vld [vmem:[%s2901_s0 + $0x80] sm:$0xff]  ;;  %v73_v56 = vld [vmem:[%s2901_s0 + $0x170] sm:$0xff] }
   0xf   :  { %1806 = vmatpush3.bf16.msra.mxu0 %v2040_v6  ;;  %2033 = vmatpush3.bf16.msra.mxu1 %v2040_v6  ;;  %v74_v57 = vld [vmem:[%s2901_s0 + $0x178] sm:$0xff]  ;;  %v44_v58 = vld [vmem:[%s2901_s0 + $0x88] sm:$0xff]  ;;  %v75_v59 = vld [vmem:[%s2901_s0 + $0x180] sm:$0xff]  ;;  %v98_v61 = vpack.c.bf16 %v42_v53, %v41_v52 }
  0x10   :  { %2035 = vmatprep.subr.msk.bf16.mxu0 %vm263_vm1, %v2041_v7  ;;  %2036 = vmatprep.subr.msk.bf16.mxu1 %vm263_vm1, %v2041_v7  ;;  %v76_v60 = vld [vmem:[%s2901_s0 + $0x188] sm:$0xff]  ;;  %v114_v62 = vpack.c.bf16 %v74_v57, %v73_v56  ;;  %v99_v63 = vpack.c.bf16 %v44_v58, %v43_v55  ;;  %v45_v2 = vld [vmem:[%s2901_s0 + $0x90] sm:$0xff]  ;;  %v46_v3 = vld [vmem:[%s2901_s0 + $0x98] sm:$0xff] }
  0x11   :  { %v115_v0 = vpack.c.bf16 %v76_v60, %v75_v59  ;;  %v2047_v1 = vld [vmem:[%s2902_s3 + $0x28] sm:$0xff]   ;;  %v2048_v4 = vld [vmem:[%s2902_s3 + $0x30] sm:$0xff]   ;;  %v47_v5 = vld [vmem:[%s2901_s0 + $0xa0] sm:$0xff]  ;;  %v100_v11 = vpack.c.bf16 %v46_v3, %v45_v2 }
  0x12   :  { %v77_v6 = vld [vmem:[%s2901_s0 + $0x190] sm:$0xff]  ;;  %v78_v7 = vld [vmem:[%s2901_s0 + $0x198] sm:$0xff]  ;;  %v48_v8 = vld [vmem:[%s2901_s0 + $0xa8] sm:$0xff] }
  0x13   :  { %1808 = vmatpush3.bf16.msra.mxu0 %v265_v14  ;;  %2034 = vmatpush3.bf16.msra.mxu1 %v265_v14  ;;  %v79_v9 = vld [vmem:[%s2901_s0 + $0x1a0] sm:$0xff]  ;;  %v80_v10 = vld [vmem:[%s2901_s0 + $0x1a8] sm:$0xff]  ;;  %v116_v12 = vpack.c.bf16 %v78_v7, %v77_v6  ;;  %v101_v13 = vpack.c.bf16 %v48_v8, %v47_v5  ;;  %v49_v15 = vld [vmem:[%s2901_s0 + $0xb0] sm:$0xff] }
  0x14   :  { %1873 = vmatprep.subr.bf16.mxu1 %v2042_v34  ;;  %v117_v14 = vpack.c.bf16 %v80_v10, %v79_v9  ;;  %v50_v16 = vld [vmem:[%s2901_s0 + $0xb8] sm:$0xff]  ;;  %v51_v17 = vld [vmem:[%s2901_s0 + $0xc0] sm:$0xff]  ;;  %v81_v18 = vld [vmem:[%s2901_s0 + $0x1b0] sm:$0xff] }
  0x15   :  { %v82_v19 = vld [vmem:[%s2901_s0 + $0x1b8] sm:$0xff]  ;;  %v53_v27 = vld [vmem:[%s2901_s0 + $0xd0] sm:$0xff]  ;;  %v55_v29 = vld [vmem:[%s2901_s0 + $0xe0] sm:$0xff] }
  0x16   :  { %1810 = vmatmul.mubr.msk.bf16.vlgmr.msra.gmra.mrb[0].mxu0 %vm166_vm0, %v92_v20  ;;  %1842 = vmatmul.mubr.msk.bf16.vlgmr.msra.gmra.mrb[0].mxu1 %vm166_vm0, %v108_v21  ;;  %v52_v20 = vld [vmem:[%s2901_s0 + $0xc8] sm:$0xff]  ;;  %v83_v21 = vld [vmem:[%s2901_s0 + $0x1c0] sm:$0xff]  ;;  %v118_v24 = vpack.c.bf16 %v82_v19, %v81_v18  ;;  %v54_v28 = vld [vmem:[%s2901_s0 + $0xd8] sm:$0xff] }
  0x17   :  { %1813 = vmatprep.mubr.msk.bf16.mxu0 %vm166_vm0, %v93_v22  ;;  %1845 = vmatprep.mubr.msk.bf16.mxu1 %vm166_vm0, %v109_v23  ;;  %v84_v22 = vld [vmem:[%s2901_s0 + $0x1c8] sm:$0xff]  ;;  %v102_v23 = vpack.c.bf16 %v50_v16, %v49_v15  ;;  %v103_v25 = vpack.c.bf16 %v52_v20, %v51_v17  ;;  %v85_v30 = vld [vmem:[%s2901_s0 + $0x1d0] sm:$0xff]  ;;  %v86_v31 = vld [vmem:[%s2901_s0 + $0x1d8] sm:$0xff] }
  0x18   :  { %1874 = vmatpush3.bf16.msra.mxu1 %v2042_v34  ;;  %v119_v26 = vpack.c.bf16 %v84_v22, %v83_v21  ;;  %v88_v34 = vld [vmem:[%s2901_s0 + $0x1e8] sm:$0xff]  ;;  %v57_v39 = vld [vmem:[%s2901_s0 + $0xf0] sm:$0xff]  ;;  %v58_v40 = vld [vmem:[%s2901_s0 + $0xf8] sm:$0xff] }
  0x19   :  { %1875 = vmatprep.subr.bf16.mxu1 %v2043_v37  ;;  %v89_v41 = vld [vmem:[%s2901_s0 + $0x1f0] sm:$0xff]  ;;  %v90_v42 = vld [vmem:[%s2901_s0 + $0x1f8] sm:$0xff]  ;;  %v106_v43 = vpack.c.bf16 %v58_v40, %v57_v39  ;;  %v2360_v46 = vld [vmem:[%s2903_s2] ss:$0 sm:$0xff] }
  0x1a   :  { %v2049_v45 = vld [vmem:[%s2902_s3 + $0x38] sm:$0xff]   ;;  %v2050_v5 = vld [vmem:[%s2904_s5] sm:$0xff]   ;;  %v2051_v6 = vld [vmem:[%s2904_s5 + $0x8] sm:$0xff]  }
  0x1b   :  { %1953 = vmatprep.subr.bf16.mxu0 %v2050_v5  ;;  %v2052_v19 = vld [vmem:[%s2904_s5 + $0x10] sm:$0xff]  }
  0x1c   :  { %1876 = vmatpush3.bf16.msra.mxu1 %v2043_v37  ;;  %1954 = vmatpush3.bf16.msra.mxu0 %v2050_v5 }
  0x1d   :  { %1877 = vmatprep.subr.bf16.mxu1 %v2044_v44  ;;  %1955 = vmatprep.subr.bf16.mxu0 %v2051_v6 }
  0x1e   :  { %1814 = vmatmul.mubr.msk.bf16.gmra.mrb[4].mxu0 %vm166_vm0, %v94_v32  ;;  %1846 = vmatmul.mubr.msk.bf16.gmra.mrb[4].mxu1 %vm166_vm0, %v110_v33  ;;  %v56_v32 = vld [vmem:[%s2901_s0 + $0xe8] sm:$0xff]  ;;  %v87_v33 = vld [vmem:[%s2901_s0 + $0x1e0] sm:$0xff] }
  0x1f   :  { %1817 = vmatprep.mubr.msk.bf16.mxu0 %vm166_vm0, %v95_v35  ;;  %1849 = vmatprep.mubr.msk.bf16.mxu1 %vm166_vm0, %v111_v36  ;;  %v104_v35 = vpack.c.bf16 %v54_v28, %v53_v27  ;;  %v120_v36 = vpack.c.bf16 %v86_v31, %v85_v30  ;;  %v105_v37 = vpack.c.bf16 %v56_v32, %v55_v29 }
  0x20   :  { %1878 = vmatpush3.bf16.msra.mxu1 %v2044_v44  ;;  %v121_v38 = vpack.c.bf16 %v88_v34, %v87_v33  ;;  %v122_v44 = vpack.c.bf16 %v90_v42, %v89_v41  ;;  %1956 = vmatpush3.bf16.msra.mxu0 %v2051_v6 }
  0x21   :  { %1879 = vmatprep.subr.bf16.mxu1 %v2045_v51  ;;  %1957 = vmatprep.subr.bf16.mxu0 %v2052_v19 }
  0x24   :  { %1880 = vmatpush3.bf16.msra.mxu1 %v2045_v51  ;;  %1958 = vmatpush3.bf16.msra.mxu0 %v2052_v19 }
  0x25   :  { %1881 = vmatprep.subr.bf16.mxu1 %v2046_v54 }
  0x26   :  { %1818 = vmatmul.mubr.msk.bf16.gmra.mrb[8].mxu0 %vm166_vm0, %v96_v47  ;;  %1850 = vmatmul.mubr.msk.bf16.gmra.mrb[8].mxu1 %vm166_vm0, %v112_v48 }
  0x27   :  { %1821 = vmatprep.mubr.msk.bf16.mxu0 %vm166_vm0, %v97_v49  ;;  %1853 = vmatprep.mubr.msk.bf16.mxu1 %vm166_vm0, %v113_v50 }
  0x28   :  { %1882 = vmatpush3.bf16.msra.mxu1 %v2046_v54 }
  0x29   :  { %1883 = vmatprep.subr.bf16.mxu1 %v2047_v1 }
  0x2c   :  { %1884 = vmatpush3.bf16.msra.mxu1 %v2047_v1 }
  0x2d   :  { %1885 = vmatprep.subr.bf16.mxu1 %v2048_v4 }
  0x2e   :  { %1822 = vmatmul.mubr.msk.bf16.gmra.mrb[12].mxu0 %vm166_vm0, %v98_v61  ;;  %1854 = vmatmul.mubr.msk.bf16.gmra.mrb[12].mxu1 %vm166_vm0, %v114_v62 }
  0x2f   :  { %1825 = vmatprep.mubr.msk.bf16.mxu0 %vm166_vm0, %v99_v63  ;;  %1857 = vmatprep.mubr.msk.bf16.mxu1 %vm166_vm0, %v115_v0 }
  0x30   :  { %1886 = vmatpush3.bf16.msra.mxu1 %v2048_v4 }
  0x31   :  { %1887 = vmatprep.subr.bf16.mxu1 %v2049_v45 }
  0x34   :  { %1888 = vmatpush3.bf16.msra.mxu1 %v2049_v45 }
  0x36   :  { %1826 = vmatmul.mubr.msk.bf16.gmra.mrb[16].mxu0 %vm166_vm0, %v100_v11  ;;  %1858 = vmatmul.mubr.msk.bf16.gmra.mrb[16].mxu1 %vm166_vm0, %v116_v12 }
  0x37   :  { %1829 = vmatprep.mubr.msk.bf16.mxu0 %vm166_vm0, %v101_v13  ;;  %1861 = vmatprep.mubr.msk.bf16.mxu1 %vm166_vm0, %v117_v14 }
  0x3e   :  { %1830 = vmatmul.mubr.msk.bf16.gmra.mrb[20].mxu0 %vm166_vm0, %v102_v23  ;;  %1862 = vmatmul.mubr.msk.bf16.gmra.mrb[20].mxu1 %vm166_vm0, %v118_v24 }
  0x3f   :  { %1833 = vmatprep.mubr.msk.bf16.mxu0 %vm166_vm0, %v103_v25  ;;  %1865 = vmatprep.mubr.msk.bf16.mxu1 %vm166_vm0, %v119_v26 }
  0x46   :  { %1834 = vmatmul.mubr.msk.bf16.gmra.mrb[24].mxu0 %vm166_vm0, %v104_v35  ;;  %1866 = vmatmul.mubr.msk.bf16.gmra.mrb[24].mxu1 %vm166_vm0, %v120_v36  ;;  %v2053_v35 = vld [vmem:[%s2904_s5 + $0x18] sm:$0xff]  }
  0x47   :  { %1837 = vmatprep.mubr.msk.bf16.mxu0 %vm166_vm0, %v105_v37  ;;  %1869 = vmatprep.mubr.msk.bf16.mxu1 %vm166_vm0, %v121_v38 }
  0x48   :  { %1959 = vmatprep.subr.bf16.mxu0 %v2053_v35 }
  0x49   :  { %1960 = vmatpush3.bf16.msra.mxu0 %v2053_v35 }
  0x4e   :  { %1838 = vmatmul.mubr.msk.bf16.gmra.mrb[28].mxu0 %vm166_vm0, %v106_v43  ;;  %1870 = vmatmul.mubr.msk.bf16.gmra.mrb[28].mxu1 %vm166_vm0, %v122_v44 }
  0xe9   :  { %v1811_v47 = vpop.f32.mrb[0].mxu0  ;;  %v1843_v48 = vpop.f32.mrb[0].mxu1 }
  0xea   :  { %v310_v49 = vadd.f32 %v1811_v47, %v2360_v46  ;;  %v301_v50 = vpop.f32.mrb[1].mxu0  ;;  %v438_v51 = vadd.f32 %v1843_v48, %v2360_v46  ;;  %v429_v52 = vpop.f32.mrb[1].mxu1 }
  0xeb   :  { %v302_v53 = vadd.f32 %v2360_v46, %v301_v50  ;;  %v1812_v54 = vpop.f32.mrb[2].mxu0  ;;  %v430_v55 = vadd.f32 %v2360_v46, %v429_v52  ;;  %v1844_v56 = vpop.f32.mrb[2].mxu1 }
  0xec   :  { %v558_v57 = vmax.f32 %v310_v49, 0.0  ;;  %v313_v58 = vadd.f32 %v1812_v54, %v2360_v46  ;;  %v304_v59 = vpop.f32.mrb[3].mxu0  ;;  %v590_v60 = vmax.f32 %v438_v51, 0.0  ;;  %v441_v61 = vadd.f32 %v1844_v56, %v2360_v46  ;;  %v432_v62 = vpop.f32.mrb[3].mxu1 }
  0xed   :  { %v556_v63 = vmax.f32 %v302_v53, 0.0  ;;  %v305_v0 = vadd.f32 %v2360_v46, %v304_v59  ;;  %v588_v1 = vmax.f32 %v430_v55, 0.0  ;;  %v433_v2 = vadd.f32 %v2360_v46, %v432_v62 }
  0xee   :  { %v559_v3 = vmax.f32 %v313_v58, 0.0  ;;  %v591_v4 = vmax.f32 %v441_v61, 0.0 }
  0xef   :  { %v557_v7 = vmax.f32 %v305_v0, 0.0  ;;  %v589_v8 = vmax.f32 %v433_v2, 0.0 }
  0xf0   :  { %v621_v9 = vpack.c.bf16 %v559_v3, %v558_v57  ;;  %v2376_v10 = vpack.c.bf16 %v591_v4, %v590_v60 }
  0xf1   :  { %v620_v11 = vpack.c.bf16 %v557_v7, %v556_v63  ;;  %v1815_v12 = vpop.f32.mrb[4].mxu0  ;;  %v2378_v13 = vpack.c.bf16 %v589_v8, %v588_v1  ;;  %v1847_v14 = vpop.f32.mrb[4].mxu1 }
  0xf2   :  { %v326_v15 = vadd.f32 %v1815_v12, %v2360_v46  ;;  %v317_v16 = vpop.f32.mrb[5].mxu0  ;;  %v454_v17 = vadd.f32 %v1847_v14, %v2360_v46  ;;  %v445_v18 = vpop.f32.mrb[5].mxu1 }
  0xf3   :  { %v318_v20 = vadd.f32 %v2360_v46, %v317_v16  ;;  %v1816_v21 = vpop.f32.mrb[6].mxu0  ;;  %1889 = vmatprep.mubr.bf16.mxu1 %v620_v11  ;;  %v446_v22 = vadd.f32 %v2360_v46, %v445_v18  ;;  %v1848_v23 = vpop.f32.mrb[6].mxu1 }
  0xf4   :  { %v329_v24 = vadd.f32 %v1816_v21, %v2360_v46  ;;  %v320_v25 = vpop.f32.mrb[7].mxu0  ;;  %1890 = vmatmul.mubr.bf16.vlgmr.msra.gmra.mrb[32].mxu1 %v621_v9  ;;  %v594_v26 = vmax.f32 %v454_v17, 0.0  ;;  %v457_v27 = vadd.f32 %v1848_v23, %v2360_v46  ;;  %v448_v28 = vpop.f32.mrb[7].mxu1  ;;  %v562_v32 = vmax.f32 %v326_v15, 0.0 }
  0xf5   :  { %v321_v29 = vadd.f32 %v2360_v46, %v320_v25  ;;  %v592_v30 = vmax.f32 %v446_v22, 0.0  ;;  %v449_v31 = vadd.f32 %v2360_v46, %v448_v28  ;;  %v560_v36 = vmax.f32 %v318_v20, 0.0 }
  0xf6   :  { %v563_v33 = vmax.f32 %v329_v24, 0.0  ;;  %v595_v34 = vmax.f32 %v457_v27, 0.0 }
  0xf7   :  { %v561_v37 = vmax.f32 %v321_v29, 0.0  ;;  %v593_v38 = vmax.f32 %v449_v31, 0.0 }
  0xf8   :  { %v623_v39 = vpack.c.bf16 %v563_v33, %v562_v32  ;;  %v2394_v40 = vpack.c.bf16 %v595_v34, %v594_v26 }
  0xf9   :  { %v622_v41 = vpack.c.bf16 %v561_v37, %v560_v36  ;;  %v1819_v42 = vpop.f32.mrb[8].mxu0  ;;  %v2396_v43 = vpack.c.bf16 %v593_v38, %v592_v30  ;;  %v1851_v44 = vpop.f32.mrb[8].mxu1 }
  0xfa   :  { %v342_v45 = vadd.f32 %v1819_v42, %v2360_v46  ;;  %v333_v47 = vpop.f32.mrb[9].mxu0  ;;  %v470_v48 = vadd.f32 %v1851_v44, %v2360_v46  ;;  %v461_v49 = vpop.f32.mrb[9].mxu1 }
  0xfb   :  { %v334_v50 = vadd.f32 %v2360_v46, %v333_v47  ;;  %v1820_v51 = vpop.f32.mrb[10].mxu0  ;;  %1893 = vmatprep.mubr.bf16.mxu1 %v622_v41  ;;  %v462_v52 = vadd.f32 %v2360_v46, %v461_v49  ;;  %v1852_v53 = vpop.f32.mrb[10].mxu1 }
  0xfc   :  { %v345_v54 = vadd.f32 %v1820_v51, %v2360_v46  ;;  %v336_v55 = vpop.f32.mrb[11].mxu0  ;;  %1894 = vmatmul.mubr.bf16.gmra.mrb[36].mxu1 %v623_v39  ;;  %v598_v56 = vmax.f32 %v470_v48, 0.0  ;;  %v473_v57 = vadd.f32 %v1852_v53, %v2360_v46  ;;  %v464_v58 = vpop.f32.mrb[11].mxu1  ;;  %v566_v62 = vmax.f32 %v342_v45, 0.0 }
  0xfd   :  { %v337_v59 = vadd.f32 %v2360_v46, %v336_v55  ;;  %v596_v60 = vmax.f32 %v462_v52, 0.0  ;;  %v465_v61 = vadd.f32 %v2360_v46, %v464_v58  ;;  %v564_v1 = vmax.f32 %v334_v50, 0.0 }
  0xfe   :  { %v567_v63 = vmax.f32 %v345_v54, 0.0  ;;  %v599_v0 = vmax.f32 %v473_v57, 0.0 }
  0xff   :  { %v565_v2 = vmax.f32 %v337_v59, 0.0  ;;  %v597_v3 = vmax.f32 %v465_v61, 0.0 }
 0x100   :  { %v625_v4 = vpack.c.bf16 %v567_v63, %v566_v62  ;;  %v2406_v5 = vpack.c.bf16 %v599_v0, %v598_v56 }
 0x101   :  { %v624_v6 = vpack.c.bf16 %v565_v2, %v564_v1  ;;  %v1823_v7 = vpop.f32.mrb[12].mxu0  ;;  %v2408_v8 = vpack.c.bf16 %v597_v3, %v596_v60  ;;  %v1855_v9 = vpop.f32.mrb[12].mxu1 }
 0x102   :  { %v358_v11 = vadd.f32 %v1823_v7, %v2360_v46  ;;  %v349_v12 = vpop.f32.mrb[13].mxu0  ;;  %v486_v14 = vadd.f32 %v1855_v9, %v2360_v46  ;;  %v477_v15 = vpop.f32.mrb[13].mxu1 }
 0x103   :  { %v350_v16 = vadd.f32 %v2360_v46, %v349_v12  ;;  %v1824_v17 = vpop.f32.mrb[14].mxu0  ;;  %1897 = vmatprep.mubr.bf16.mxu1 %v624_v6  ;;  %v478_v18 = vadd.f32 %v2360_v46, %v477_v15  ;;  %v1856_v19 = vpop.f32.mrb[14].mxu1 }
 0x104   :  { %v361_v20 = vadd.f32 %v1824_v17, %v2360_v46  ;;  %v352_v21 = vpop.f32.mrb[15].mxu0  ;;  %1898 = vmatmul.mubr.bf16.gmra.mrb[40].mxu1 %v625_v4  ;;  %v602_v22 = vmax.f32 %v486_v14, 0.0  ;;  %v489_v23 = vadd.f32 %v1856_v19, %v2360_v46  ;;  %v480_v24 = vpop.f32.mrb[15].mxu1  ;;  %v570_v28 = vmax.f32 %v358_v11, 0.0 }
 0x105   :  { %v353_v25 = vadd.f32 %v2360_v46, %v352_v21  ;;  %v600_v26 = vmax.f32 %v478_v18, 0.0  ;;  %v481_v27 = vadd.f32 %v2360_v46, %v480_v24  ;;  %v568_v31 = vmax.f32 %v350_v16, 0.0 }
 0x106   :  { %v571_v29 = vmax.f32 %v361_v20, 0.0  ;;  %v603_v30 = vmax.f32 %v489_v23, 0.0 }
 0x107   :  { %v569_v32 = vmax.f32 %v353_v25, 0.0  ;;  %v601_v33 = vmax.f32 %v481_v27, 0.0 }
 0x108   :  { %v627_v34 = vpack.c.bf16 %v571_v29, %v570_v28  ;;  %v2418_v35 = vpack.c.bf16 %v603_v30, %v602_v22 }
 0x109   :  { %v626_v36 = vpack.c.bf16 %v569_v32, %v568_v31  ;;  %v1827_v37 = vpop.f32.mrb[16].mxu0  ;;  %v2420_v38 = vpack.c.bf16 %v601_v33, %v600_v26  ;;  %v1859_v39 = vpop.f32.mrb[16].mxu1 }
 0x10a   :  { %v374_v41 = vadd.f32 %v1827_v37, %v2360_v46  ;;  %v365_v42 = vpop.f32.mrb[17].mxu0  ;;  %v502_v44 = vadd.f32 %v1859_v39, %v2360_v46  ;;  %v493_v45 = vpop.f32.mrb[17].mxu1 }
 0x10b   :  { %v366_v47 = vadd.f32 %v2360_v46, %v365_v42  ;;  %v1828_v48 = vpop.f32.mrb[18].mxu0  ;;  %1901 = vmatprep.mubr.bf16.mxu1 %v626_v36  ;;  %v494_v49 = vadd.f32 %v2360_v46, %v493_v45  ;;  %v1860_v50 = vpop.f32.mrb[18].mxu1 }
 0x10c   :  { %v377_v51 = vadd.f32 %v1828_v48, %v2360_v46  ;;  %v368_v52 = vpop.f32.mrb[19].mxu0  ;;  %1902 = vmatmul.mubr.bf16.gmra.mrb[44].mxu1 %v627_v34  ;;  %v606_v53 = vmax.f32 %v502_v44, 0.0  ;;  %v505_v54 = vadd.f32 %v1860_v50, %v2360_v46  ;;  %v496_v55 = vpop.f32.mrb[19].mxu1  ;;  %v574_v59 = vmax.f32 %v374_v41, 0.0 }
 0x10d   :  { %v369_v56 = vadd.f32 %v2360_v46, %v368_v52  ;;  %v604_v57 = vmax.f32 %v494_v49, 0.0  ;;  %v497_v58 = vadd.f32 %v2360_v46, %v496_v55  ;;  %v572_v62 = vmax.f32 %v366_v47, 0.0 }
 0x10e   :  { %v575_v60 = vmax.f32 %v377_v51, 0.0  ;;  %v607_v61 = vmax.f32 %v505_v54, 0.0 }
 0x10f   :  { %v573_v63 = vmax.f32 %v369_v56, 0.0  ;;  %v605_v0 = vmax.f32 %v497_v58, 0.0 }
 0x110   :  { %v629_v1 = vpack.c.bf16 %v575_v60, %v574_v59  ;;  %v2430_v2 = vpack.c.bf16 %v607_v61, %v606_v53 }
 0x111   :  { %v628_v3 = vpack.c.bf16 %v573_v63, %v572_v62  ;;  %v1831_v4 = vpop.f32.mrb[20].mxu0  ;;  %v2432_v6 = vpack.c.bf16 %v605_v0, %v604_v57  ;;  %v1863_v7 = vpop.f32.mrb[20].mxu1 }
 0x112   :  { %v390_v9 = vadd.f32 %v1831_v4, %v2360_v46  ;;  %v381_v11 = vpop.f32.mrb[21].mxu0  ;;  %v518_v12 = vadd.f32 %v1863_v7, %v2360_v46  ;;  %v509_v14 = vpop.f32.mrb[21].mxu1 }
 0x113   :  { %v382_v15 = vadd.f32 %v2360_v46, %v381_v11  ;;  %v1832_v16 = vpop.f32.mrb[22].mxu0  ;;  %1905 = vmatprep.mubr.bf16.mxu1 %v628_v3  ;;  %v510_v17 = vadd.f32 %v2360_v46, %v509_v14  ;;  %v1864_v18 = vpop.f32.mrb[22].mxu1 }
 0x114   :  { %v393_v19 = vadd.f32 %v1832_v16, %v2360_v46  ;;  %v384_v20 = vpop.f32.mrb[23].mxu0  ;;  %1906 = vmatmul.mubr.bf16.gmra.mrb[48].mxu1 %v629_v1  ;;  %v610_v21 = vmax.f32 %v518_v12, 0.0  ;;  %v521_v22 = vadd.f32 %v1864_v18, %v2360_v46  ;;  %v512_v23 = vpop.f32.mrb[23].mxu1  ;;  %v578_v27 = vmax.f32 %v390_v9, 0.0 }
 0x115   :  { %v385_v24 = vadd.f32 %v2360_v46, %v384_v20  ;;  %v608_v25 = vmax.f32 %v510_v17, 0.0  ;;  %v513_v26 = vadd.f32 %v2360_v46, %v512_v23  ;;  %v576_v30 = vmax.f32 %v382_v15, 0.0 }
 0x116   :  { %v579_v28 = vmax.f32 %v393_v19, 0.0  ;;  %v611_v29 = vmax.f32 %v521_v22, 0.0 }
 0x117   :  { %v577_v31 = vmax.f32 %v385_v24, 0.0  ;;  %v609_v32 = vmax.f32 %v513_v26, 0.0 }
 0x118   :  { %v631_v33 = vpack.c.bf16 %v579_v28, %v578_v27  ;;  %v2442_v34 = vpack.c.bf16 %v611_v29, %v610_v21 }
 0x119   :  { %v630_v36 = vpack.c.bf16 %v577_v31, %v576_v30  ;;  %v1835_v37 = vpop.f32.mrb[24].mxu0  ;;  %v2444_v39 = vpack.c.bf16 %v609_v32, %v608_v25  ;;  %v1867_v41 = vpop.f32.mrb[24].mxu1 }
 0x11a   :  { %v406_v42 = vadd.f32 %v1835_v37, %v2360_v46  ;;  %v397_v44 = vpop.f32.mrb[25].mxu0  ;;  %v534_v45 = vadd.f32 %v1867_v41, %v2360_v46  ;;  %v525_v47 = vpop.f32.mrb[25].mxu1 }
 0x11b   :  { %v398_v48 = vadd.f32 %v2360_v46, %v397_v44  ;;  %v1836_v49 = vpop.f32.mrb[26].mxu0  ;;  %1909 = vmatprep.mubr.bf16.mxu1 %v630_v36  ;;  %v526_v50 = vadd.f32 %v2360_v46, %v525_v47  ;;  %v1868_v51 = vpop.f32.mrb[26].mxu1 }
 0x11c   :  { %v409_v52 = vadd.f32 %v1836_v49, %v2360_v46  ;;  %v400_v53 = vpop.f32.mrb[27].mxu0  ;;  %1910 = vmatmul.mubr.bf16.gmra.mrb[52].mxu1 %v631_v33  ;;  %v614_v54 = vmax.f32 %v534_v45, 0.0  ;;  %v537_v55 = vadd.f32 %v1868_v51, %v2360_v46  ;;  %v528_v56 = vpop.f32.mrb[27].mxu1  ;;  %v582_v60 = vmax.f32 %v406_v42, 0.0 }
 0x11d   :  { %v401_v57 = vadd.f32 %v2360_v46, %v400_v53  ;;  %v612_v58 = vmax.f32 %v526_v50, 0.0  ;;  %v529_v59 = vadd.f32 %v2360_v46, %v528_v56  ;;  %v580_v63 = vmax.f32 %v398_v48, 0.0 }
 0x11e   :  { %v583_v61 = vmax.f32 %v409_v52, 0.0  ;;  %v615_v62 = vmax.f32 %v537_v55, 0.0 }
 0x11f   :  { %v581_v0 = vmax.f32 %v401_v57, 0.0  ;;  %v613_v1 = vmax.f32 %v529_v59, 0.0 }
 0x120   :  { %v633_v3 = vpack.c.bf16 %v583_v61, %v582_v60  ;;  %v649_v4 = vpack.c.bf16 %v615_v62, %v614_v54 }
 0x121   :  { %v632_v7 = vpack.c.bf16 %v581_v0, %v580_v63  ;;  %v1839_v9 = vpop.f32.mrb[28].mxu0  ;;  %v648_v11 = vpack.c.bf16 %v613_v1, %v612_v58  ;;  %v1871_v12 = vpop.f32.mrb[28].mxu1 }
 0x122   :  { %v422_v14 = vadd.f32 %v1839_v9, %v2360_v46  ;;  %v413_v15 = vpop.f32.mrb[29].mxu0  ;;  %v550_v16 = vadd.f32 %v1871_v12, %v2360_v46  ;;  %v541_v17 = vpop.f32.mrb[29].mxu1 }
 0x123   :  { %v414_v18 = vadd.f32 %v2360_v46, %v413_v15  ;;  %v1840_v19 = vpop.f32.mrb[30].mxu0  ;;  %1913 = vmatprep.mubr.bf16.mxu1 %v632_v7  ;;  %v542_v20 = vadd.f32 %v2360_v46, %v541_v17  ;;  %v1872_v21 = vpop.f32.mrb[30].mxu1 }
 0x124   :  { %v425_v22 = vadd.f32 %v1840_v19, %v2360_v46  ;;  %v416_v23 = vpop.f32.mrb[31].mxu0  ;;  %1914 = vmatmul.mubr.bf16.gmra.mrb[56].mxu1 %v633_v3  ;;  %v618_v24 = vmax.f32 %v550_v16, 0.0  ;;  %v553_v25 = vadd.f32 %v1872_v21, %v2360_v46  ;;  %v544_v26 = vpop.f32.mrb[31].mxu1  ;;  %v586_v30 = vmax.f32 %v422_v14, 0.0 }
 0x125   :  { %v417_v27 = vadd.f32 %v2360_v46, %v416_v23  ;;  %v616_v28 = vmax.f32 %v542_v20, 0.0  ;;  %v545_v29 = vadd.f32 %v2360_v46, %v544_v26  ;;  %v584_v33 = vmax.f32 %v414_v18, 0.0  ;;  %v2477_v46 = vld [vmem:[%s2905_s4] ss:$0 sm:$0xff] }
 0x126   :  { %v587_v31 = vmax.f32 %v425_v22, 0.0  ;;  %v619_v32 = vmax.f32 %v553_v25, 0.0 }
 0x127   :  { %v585_v36 = vmax.f32 %v417_v27, 0.0  ;;  %v617_v37 = vmax.f32 %v545_v29, 0.0 }
 0x128   :  { %v635_v41 = vpack.c.bf16 %v587_v31, %v586_v30  ;;  %v651_v42 = vpack.c.bf16 %v619_v32, %v618_v24 }
 0x129   :  { %v634_v44 = vpack.c.bf16 %v585_v36, %v584_v33  ;;  %v650_v45 = vpack.c.bf16 %v617_v37, %v616_v28 }
 0x12b   :  { %1917 = vmatprep.mubr.bf16.mxu1 %v634_v44 }
 0x12c   :  { %1918 = vmatmul.mubr.bf16.gmra.mrb[60].mxu1 %v635_v41 }
 0x12d   :  { %1921 = vmatprep.mubr.bf16.mxu1 %v2378_v13 }
 0x134   :  { %1922 = vmatmul.mubr.bf16.gmra.mrb[64].mxu1 %v2376_v10 }
 0x135   :  { %1925 = vmatprep.mubr.bf16.mxu1 %v2396_v43 }
 0x13c   :  { %1926 = vmatmul.mubr.bf16.gmra.mrb[68].mxu1 %v2394_v40 }
 0x13d   :  { %1929 = vmatprep.mubr.bf16.mxu1 %v2408_v8 }
 0x144   :  { %1930 = vmatmul.mubr.bf16.gmra.mrb[72].mxu1 %v2406_v5 }
 0x145   :  { %1933 = vmatprep.mubr.bf16.mxu1 %v2420_v38 }
 0x14c   :  { %1934 = vmatmul.mubr.bf16.gmra.mrb[76].mxu1 %v2418_v35 }
 0x14d   :  { %1937 = vmatprep.mubr.bf16.mxu1 %v2432_v6 }
 0x154   :  { %1938 = vmatmul.mubr.bf16.gmra.mrb[80].mxu1 %v2430_v2 }
 0x155   :  { %1941 = vmatprep.mubr.bf16.mxu1 %v2444_v39 }
 0x15c   :  { %1942 = vmatmul.mubr.bf16.gmra.mrb[84].mxu1 %v2442_v34 }
 0x15d   :  { %1945 = vmatprep.mubr.bf16.mxu1 %v648_v11 }
 0x164   :  { %1946 = vmatmul.mubr.bf16.gmra.mrb[88].mxu1 %v649_v4 }
 0x165   :  { %1949 = vmatprep.mubr.bf16.mxu1 %v650_v45 }
 0x16c   :  { %1950 = vmatmul.mubr.bf16.gmra.mrb[92].mxu1 %v651_v42 }
 0x1c7   :  { %v1891_v10 = vpop.f32.mrb[32].mxu1 }
 0x1c8   :  { %v766_v13 = vadd.f32 %v1891_v10, %v2477_v46  ;;  %v757_v40 = vpop.f32.mrb[33].mxu1 }
 0x1c9   :  { %v758_v43 = vadd.f32 %v2477_v46, %v757_v40  ;;  %v1892_v5 = vpop.f32.mrb[34].mxu1 }
 0x1ca   :  { %v769_v8 = vadd.f32 %v1892_v5, %v2477_v46  ;;  %v760_v35 = vpop.f32.mrb[35].mxu1  ;;  %v1014_v2 = vmax.f32 %v766_v13, 0.0 }
 0x1cb   :  { %v761_v38 = vadd.f32 %v2477_v46, %v760_v35  ;;  %v1012_v34 = vmax.f32 %v758_v43, 0.0 }
 0x1cc   :  { %v1015_v6 = vmax.f32 %v769_v8, 0.0 }
 0x1cd   :  { %v1013_v39 = vmax.f32 %v761_v38, 0.0 }
 0x1ce   :  { %v1077_v47 = vpack.c.bf16 %v1015_v6, %v1014_v2 }
 0x1cf   :  { %v1076_v48 = vpack.c.bf16 %v1013_v39, %v1012_v34  ;;  %v1895_v49 = vpop.f32.mrb[36].mxu1 }
 0x1d0   :  { %v782_v50 = vadd.f32 %v1895_v49, %v2477_v46  ;;  %v773_v51 = vpop.f32.mrb[37].mxu1 }
 0x1d1   :  { %v774_v52 = vadd.f32 %v2477_v46, %v773_v51  ;;  %v1896_v53 = vpop.f32.mrb[38].mxu1  ;;  %1961 = vmatprep.mubr.msk.bf16.mxu0 %vm1147_vm2, %v1076_v48 }
 0x1d2   :  { %v785_v54 = vadd.f32 %v1896_v53, %v2477_v46  ;;  %v776_v55 = vpop.f32.mrb[39].mxu1  ;;  %1962 = vmatmul.mubr.msk.bf16.vlgmr.msra.gmra.mrb[32].mxu0 %vm1147_vm2, %v1077_v47  ;;  %v1018_v57 = vmax.f32 %v782_v50, 0.0 }
 0x1d3   :  { %v777_v56 = vadd.f32 %v2477_v46, %v776_v55  ;;  %v1016_v59 = vmax.f32 %v774_v52, 0.0 }
 0x1d4   :  { %v1019_v58 = vmax.f32 %v785_v54, 0.0 }
 0x1d5   :  { %v1017_v60 = vmax.f32 %v777_v56, 0.0 }
 0x1d6   :  { %v1079_v61 = vpack.c.bf16 %v1019_v58, %v1018_v57 }
 0x1d7   :  { %v1078_v62 = vpack.c.bf16 %v1017_v60, %v1016_v59  ;;  %v1899_v63 = vpop.f32.mrb[40].mxu1 }
 0x1d8   :  { %v798_v0 = vadd.f32 %v1899_v63, %v2477_v46  ;;  %v789_v1 = vpop.f32.mrb[41].mxu1 }
 0x1d9   :  { %v790_v3 = vadd.f32 %v2477_v46, %v789_v1  ;;  %v1900_v4 = vpop.f32.mrb[42].mxu1  ;;  %1965 = vmatprep.mubr.msk.bf16.mxu0 %vm1147_vm2, %v1078_v62 }
 0x1da   :  { %v801_v7 = vadd.f32 %v1900_v4, %v2477_v46  ;;  %v792_v9 = vpop.f32.mrb[43].mxu1  ;;  %1966 = vmatmul.mubr.msk.bf16.gmra.mrb[36].mxu0 %vm1147_vm2, %v1079_v61  ;;  %v1022_v12 = vmax.f32 %v798_v0, 0.0 }
 0x1db   :  { %v793_v11 = vadd.f32 %v2477_v46, %v792_v9  ;;  %v1020_v15 = vmax.f32 %v790_v3, 0.0 }
 0x1dc   :  { %v1023_v14 = vmax.f32 %v801_v7, 0.0 }
 0x1dd   :  { %v1021_v16 = vmax.f32 %v793_v11, 0.0 }
 0x1de   :  { %v1081_v17 = vpack.c.bf16 %v1023_v14, %v1022_v12 }
 0x1df   :  { %v1080_v18 = vpack.c.bf16 %v1021_v16, %v1020_v15  ;;  %v1903_v19 = vpop.f32.mrb[44].mxu1 }
 0x1e0   :  { %v814_v20 = vadd.f32 %v1903_v19, %v2477_v46  ;;  %v805_v21 = vpop.f32.mrb[45].mxu1 }
 0x1e1   :  { %v806_v22 = vadd.f32 %v2477_v46, %v805_v21  ;;  %v1904_v23 = vpop.f32.mrb[46].mxu1  ;;  %1969 = vmatprep.mubr.msk.bf16.mxu0 %vm1147_vm2, %v1080_v18 }
 0x1e2   :  { %v817_v24 = vadd.f32 %v1904_v23, %v2477_v46  ;;  %v808_v25 = vpop.f32.mrb[47].mxu1  ;;  %1970 = vmatmul.mubr.msk.bf16.gmra.mrb[40].mxu0 %vm1147_vm2, %v1081_v17  ;;  %v1026_v27 = vmax.f32 %v814_v20, 0.0 }
 0x1e3   :  { %v809_v26 = vadd.f32 %v2477_v46, %v808_v25  ;;  %v1024_v29 = vmax.f32 %v806_v22, 0.0 }
 0x1e4   :  { %v1027_v28 = vmax.f32 %v817_v24, 0.0 }
 0x1e5   :  { %v1025_v30 = vmax.f32 %v809_v26, 0.0 }
 0x1e6   :  { %v1083_v31 = vpack.c.bf16 %v1027_v28, %v1026_v27 }
 0x1e7   :  { %v1082_v32 = vpack.c.bf16 %v1025_v30, %v1024_v29  ;;  %v1907_v33 = vpop.f32.mrb[48].mxu1 }
 0x1e8   :  { %v830_v36 = vadd.f32 %v1907_v33, %v2477_v46  ;;  %v821_v37 = vpop.f32.mrb[49].mxu1 }
 0x1e9   :  { %v822_v41 = vadd.f32 %v2477_v46, %v821_v37  ;;  %v1908_v42 = vpop.f32.mrb[50].mxu1  ;;  %1973 = vmatprep.mubr.msk.bf16.mxu0 %vm1147_vm2, %v1082_v32 }
 0x1ea   :  { %v833_v44 = vadd.f32 %v1908_v42, %v2477_v46  ;;  %v824_v45 = vpop.f32.mrb[51].mxu1  ;;  %1974 = vmatmul.mubr.msk.bf16.gmra.mrb[44].mxu0 %vm1147_vm2, %v1083_v31  ;;  %v1030_v13 = vmax.f32 %v830_v36, 0.0 }
 0x1eb   :  { %v825_v10 = vadd.f32 %v2477_v46, %v824_v45  ;;  %v1028_v43 = vmax.f32 %v822_v41, 0.0 }
 0x1ec   :  { %v1031_v40 = vmax.f32 %v833_v44, 0.0 }
 0x1ed   :  { %v1029_v5 = vmax.f32 %v825_v10, 0.0 }
 0x1ee   :  { %v1085_v8 = vpack.c.bf16 %v1031_v40, %v1030_v13 }
 0x1ef   :  { %v1084_v35 = vpack.c.bf16 %v1029_v5, %v1028_v43  ;;  %v1911_v38 = vpop.f32.mrb[52].mxu1 }
 0x1f0   :  { %v846_v2 = vadd.f32 %v1911_v38, %v2477_v46  ;;  %v837_v6 = vpop.f32.mrb[53].mxu1 }
 0x1f1   :  { %v838_v34 = vadd.f32 %v2477_v46, %v837_v6  ;;  %v1912_v39 = vpop.f32.mrb[54].mxu1  ;;  %1977 = vmatprep.mubr.msk.bf16.mxu0 %vm1147_vm2, %v1084_v35 }
 0x1f2   :  { %v849_v47 = vadd.f32 %v1912_v39, %v2477_v46  ;;  %v840_v48 = vpop.f32.mrb[55].mxu1  ;;  %1978 = vmatmul.mubr.msk.bf16.gmra.mrb[48].mxu0 %vm1147_vm2, %v1085_v8  ;;  %v1034_v50 = vmax.f32 %v846_v2, 0.0 }
 0x1f3   :  { %v841_v49 = vadd.f32 %v2477_v46, %v840_v48  ;;  %v1032_v52 = vmax.f32 %v838_v34, 0.0 }
 0x1f4   :  { %v1035_v51 = vmax.f32 %v849_v47, 0.0 }
 0x1f5   :  { %v1033_v53 = vmax.f32 %v841_v49, 0.0 }
 0x1f6   :  { %v1087_v54 = vpack.c.bf16 %v1035_v51, %v1034_v50 }
 0x1f7   :  { %v1086_v55 = vpack.c.bf16 %v1033_v53, %v1032_v52  ;;  %v1915_v56 = vpop.f32.mrb[56].mxu1 }
 0x1f8   :  { %v862_v57 = vadd.f32 %v1915_v56, %v2477_v46  ;;  %v853_v58 = vpop.f32.mrb[57].mxu1 }
 0x1f9   :  { %v854_v59 = vadd.f32 %v2477_v46, %v853_v58  ;;  %v1916_v60 = vpop.f32.mrb[58].mxu1  ;;  %1981 = vmatprep.mubr.msk.bf16.mxu0 %vm1147_vm2, %v1086_v55 }
 0x1fa   :  { %v865_v61 = vadd.f32 %v1916_v60, %v2477_v46  ;;  %v856_v62 = vpop.f32.mrb[59].mxu1  ;;  %1982 = vmatmul.mubr.msk.bf16.gmra.mrb[52].mxu0 %vm1147_vm2, %v1087_v54  ;;  %v1038_v0 = vmax.f32 %v862_v57, 0.0 }
 0x1fb   :  { %v857_v63 = vadd.f32 %v2477_v46, %v856_v62  ;;  %v1036_v3 = vmax.f32 %v854_v59, 0.0 }
 0x1fc   :  { %v1039_v1 = vmax.f32 %v865_v61, 0.0 }
 0x1fd   :  { %v1037_v4 = vmax.f32 %v857_v63, 0.0 }
 0x1fe   :  { %v1089_v7 = vpack.c.bf16 %v1039_v1, %v1038_v0 }
 0x1ff   :  { %v1088_v9 = vpack.c.bf16 %v1037_v4, %v1036_v3  ;;  %v1919_v11 = vpop.f32.mrb[60].mxu1 }
 0x200   :  { %v878_v12 = vadd.f32 %v1919_v11, %v2477_v46  ;;  %v869_v14 = vpop.f32.mrb[61].mxu1 }
 0x201   :  { %v870_v15 = vadd.f32 %v2477_v46, %v869_v14  ;;  %v1920_v16 = vpop.f32.mrb[62].mxu1  ;;  %1985 = vmatprep.mubr.msk.bf16.mxu0 %vm1147_vm2, %v1088_v9 }
 0x202   :  { %v881_v17 = vadd.f32 %v1920_v16, %v2477_v46  ;;  %v872_v18 = vpop.f32.mrb[63].mxu1  ;;  %1986 = vmatmul.mubr.msk.bf16.gmra.mrb[56].mxu0 %vm1147_vm2, %v1089_v7  ;;  %v1042_v20 = vmax.f32 %v878_v12, 0.0 }
 0x203   :  { %v873_v19 = vadd.f32 %v2477_v46, %v872_v18  ;;  %v1040_v22 = vmax.f32 %v870_v15, 0.0 }
 0x204   :  { %v1043_v21 = vmax.f32 %v881_v17, 0.0 }
 0x205   :  { %v1041_v23 = vmax.f32 %v873_v19, 0.0 }
 0x206   :  { %v1091_v24 = vpack.c.bf16 %v1043_v21, %v1042_v20 }
 0x207   :  { %v1090_v25 = vpack.c.bf16 %v1041_v23, %v1040_v22  ;;  %v1923_v26 = vpop.f32.mrb[64].mxu1 }
 0x208   :  { %v894_v27 = vadd.f32 %v1923_v26, %v2477_v46  ;;  %v885_v28 = vpop.f32.mrb[65].mxu1 }
 0x209   :  { %v886_v29 = vadd.f32 %v2477_v46, %v885_v28  ;;  %v1924_v30 = vpop.f32.mrb[66].mxu1  ;;  %1989 = vmatprep.mubr.msk.bf16.mxu0 %vm1147_vm2, %v1090_v25 }
 0x20a   :  { %v897_v31 = vadd.f32 %v1924_v30, %v2477_v46  ;;  %v888_v32 = vpop.f32.mrb[67].mxu1  ;;  %1990 = vmatmul.mubr.msk.bf16.gmra.mrb[60].mxu0 %vm1147_vm2, %v1091_v24  ;;  %v1046_v36 = vmax.f32 %v894_v27, 0.0 }
 0x20b   :  { %v889_v33 = vadd.f32 %v2477_v46, %v888_v32  ;;  %v1044_v41 = vmax.f32 %v886_v29, 0.0 }
 0x20c   :  { %v1047_v37 = vmax.f32 %v897_v31, 0.0 }
 0x20d   :  { %v1045_v42 = vmax.f32 %v889_v33, 0.0 }
 0x20e   :  { %v1093_v44 = vpack.c.bf16 %v1047_v37, %v1046_v36 }
 0x20f   :  { %v1092_v45 = vpack.c.bf16 %v1045_v42, %v1044_v41  ;;  %v1927_v10 = vpop.f32.mrb[68].mxu1 }
 0x210   :  { %v910_v13 = vadd.f32 %v1927_v10, %v2477_v46  ;;  %v901_v40 = vpop.f32.mrb[69].mxu1 }
 0x211   :  { %v902_v43 = vadd.f32 %v2477_v46, %v901_v40  ;;  %v1928_v5 = vpop.f32.mrb[70].mxu1  ;;  %1993 = vmatprep.mubr.msk.bf16.mxu0 %vm1147_vm2, %v1092_v45 }
 0x212   :  { %v913_v8 = vadd.f32 %v1928_v5, %v2477_v46  ;;  %v904_v35 = vpop.f32.mrb[71].mxu1  ;;  %1994 = vmatmul.mubr.msk.bf16.gmra.mrb[64].mxu0 %vm1147_vm2, %v1093_v44  ;;  %v1050_v2 = vmax.f32 %v910_v13, 0.0 }
 0x213   :  { %v905_v38 = vadd.f32 %v2477_v46, %v904_v35  ;;  %v1048_v34 = vmax.f32 %v902_v43, 0.0 }
 0x214   :  { %v1051_v6 = vmax.f32 %v913_v8, 0.0 }
 0x215   :  { %v1049_v39 = vmax.f32 %v905_v38, 0.0 }
 0x216   :  { %v1095_v47 = vpack.c.bf16 %v1051_v6, %v1050_v2 }
 0x217   :  { %v1094_v48 = vpack.c.bf16 %v1049_v39, %v1048_v34  ;;  %v1931_v49 = vpop.f32.mrb[72].mxu1 }
 0x218   :  { %v926_v50 = vadd.f32 %v1931_v49, %v2477_v46  ;;  %v917_v51 = vpop.f32.mrb[73].mxu1 }
 0x219   :  { %v918_v52 = vadd.f32 %v2477_v46, %v917_v51  ;;  %v1932_v53 = vpop.f32.mrb[74].mxu1  ;;  %1997 = vmatprep.mubr.msk.bf16.mxu0 %vm1147_vm2, %v1094_v48 }
 0x21a   :  { %v929_v54 = vadd.f32 %v1932_v53, %v2477_v46  ;;  %v920_v55 = vpop.f32.mrb[75].mxu1  ;;  %1998 = vmatmul.mubr.msk.bf16.gmra.mrb[68].mxu0 %vm1147_vm2, %v1095_v47  ;;  %v1054_v57 = vmax.f32 %v926_v50, 0.0 }
 0x21b   :  { %v921_v56 = vadd.f32 %v2477_v46, %v920_v55  ;;  %v1052_v59 = vmax.f32 %v918_v52, 0.0 }
 0x21c   :  { %v1055_v58 = vmax.f32 %v929_v54, 0.0 }
 0x21d   :  { %v1053_v60 = vmax.f32 %v921_v56, 0.0 }
 0x21e   :  { %v1097_v61 = vpack.c.bf16 %v1055_v58, %v1054_v57 }
 0x21f   :  { %v1096_v62 = vpack.c.bf16 %v1053_v60, %v1052_v59  ;;  %v1935_v63 = vpop.f32.mrb[76].mxu1 }
 0x220   :  { %v942_v0 = vadd.f32 %v1935_v63, %v2477_v46  ;;  %v933_v1 = vpop.f32.mrb[77].mxu1 }
 0x221   :  { %v934_v3 = vadd.f32 %v2477_v46, %v933_v1  ;;  %v1936_v4 = vpop.f32.mrb[78].mxu1  ;;  %2001 = vmatprep.mubr.msk.bf16.mxu0 %vm1147_vm2, %v1096_v62 }
 0x222   :  { %v945_v7 = vadd.f32 %v1936_v4, %v2477_v46  ;;  %v936_v9 = vpop.f32.mrb[79].mxu1  ;;  %2002 = vmatmul.mubr.msk.bf16.gmra.mrb[72].mxu0 %vm1147_vm2, %v1097_v61  ;;  %v1058_v12 = vmax.f32 %v942_v0, 0.0 }
 0x223   :  { %v937_v11 = vadd.f32 %v2477_v46, %v936_v9  ;;  %v1056_v15 = vmax.f32 %v934_v3, 0.0 }
 0x224   :  { %v1059_v14 = vmax.f32 %v945_v7, 0.0 }
 0x225   :  { %v1057_v16 = vmax.f32 %v937_v11, 0.0  ;;  %v2578_v11 = vld [vmem:[%s2906_s6] ss:$0 sm:$0xff] }
 0x226   :  { %v1099_v17 = vpack.c.bf16 %v1059_v14, %v1058_v12 }
 0x227   :  { %v1098_v18 = vpack.c.bf16 %v1057_v16, %v1056_v15  ;;  %v1939_v19 = vpop.f32.mrb[80].mxu1 }
 0x228   :  { %v958_v20 = vadd.f32 %v1939_v19, %v2477_v46  ;;  %v949_v21 = vpop.f32.mrb[81].mxu1 }
 0x229   :  { %v950_v22 = vadd.f32 %v2477_v46, %v949_v21  ;;  %v1940_v23 = vpop.f32.mrb[82].mxu1  ;;  %2005 = vmatprep.mubr.msk.bf16.mxu0 %vm1147_vm2, %v1098_v18 }
 0x22a   :  { %v961_v24 = vadd.f32 %v1940_v23, %v2477_v46  ;;  %v952_v25 = vpop.f32.mrb[83].mxu1  ;;  %2006 = vmatmul.mubr.msk.bf16.gmra.mrb[76].mxu0 %vm1147_vm2, %v1099_v17  ;;  %v1062_v27 = vmax.f32 %v958_v20, 0.0 }
 0x22b   :  { %v953_v26 = vadd.f32 %v2477_v46, %v952_v25  ;;  %v1060_v29 = vmax.f32 %v950_v22, 0.0 }
 0x22c   :  { %v1063_v28 = vmax.f32 %v961_v24, 0.0 }
 0x22d   :  { %v1061_v30 = vmax.f32 %v953_v26, 0.0 }
 0x22e   :  { %v1101_v31 = vpack.c.bf16 %v1063_v28, %v1062_v27 }
 0x22f   :  { %v1100_v32 = vpack.c.bf16 %v1061_v30, %v1060_v29  ;;  %v1943_v33 = vpop.f32.mrb[84].mxu1 }
 0x230   :  { %v974_v36 = vadd.f32 %v1943_v33, %v2477_v46  ;;  %v965_v37 = vpop.f32.mrb[85].mxu1 }
 0x231   :  { %v966_v41 = vadd.f32 %v2477_v46, %v965_v37  ;;  %v1944_v42 = vpop.f32.mrb[86].mxu1  ;;  %2009 = vmatprep.mubr.msk.bf16.mxu0 %vm1147_vm2, %v1100_v32 }
 0x232   :  { %v977_v44 = vadd.f32 %v1944_v42, %v2477_v46  ;;  %v968_v45 = vpop.f32.mrb[87].mxu1  ;;  %2010 = vmatmul.mubr.msk.bf16.gmra.mrb[80].mxu0 %vm1147_vm2, %v1101_v31  ;;  %v1066_v13 = vmax.f32 %v974_v36, 0.0 }
 0x233   :  { %v969_v10 = vadd.f32 %v2477_v46, %v968_v45  ;;  %v1064_v43 = vmax.f32 %v966_v41, 0.0 }
 0x234   :  { %v1067_v40 = vmax.f32 %v977_v44, 0.0 }
 0x235   :  { %v1065_v5 = vmax.f32 %v969_v10, 0.0 }
 0x236   :  { %v1103_v8 = vpack.c.bf16 %v1067_v40, %v1066_v13 }
 0x237   :  { %v1102_v35 = vpack.c.bf16 %v1065_v5, %v1064_v43  ;;  %v1947_v38 = vpop.f32.mrb[88].mxu1 }
 0x238   :  { %v990_v2 = vadd.f32 %v1947_v38, %v2477_v46  ;;  %v981_v6 = vpop.f32.mrb[89].mxu1 }
 0x239   :  { %v982_v34 = vadd.f32 %v2477_v46, %v981_v6  ;;  %v1948_v39 = vpop.f32.mrb[90].mxu1  ;;  %2013 = vmatprep.mubr.msk.bf16.mxu0 %vm1147_vm2, %v1102_v35 }
 0x23a   :  { %v993_v47 = vadd.f32 %v1948_v39, %v2477_v46  ;;  %v984_v48 = vpop.f32.mrb[91].mxu1  ;;  %2014 = vmatmul.mubr.msk.bf16.gmra.mrb[84].mxu0 %vm1147_vm2, %v1103_v8  ;;  %v1070_v50 = vmax.f32 %v990_v2, 0.0 }
 0x23b   :  { %v985_v49 = vadd.f32 %v2477_v46, %v984_v48  ;;  %v1068_v52 = vmax.f32 %v982_v34, 0.0 }
 0x23c   :  { %v1071_v51 = vmax.f32 %v993_v47, 0.0 }
 0x23d   :  { %v1069_v53 = vmax.f32 %v985_v49, 0.0 }
 0x23e   :  { %v1105_v54 = vpack.c.bf16 %v1071_v51, %v1070_v50 }
 0x23f   :  { %v1104_v55 = vpack.c.bf16 %v1069_v53, %v1068_v52  ;;  %v1951_v56 = vpop.f32.mrb[92].mxu1 }
 0x240   :  { %v1006_v57 = vadd.f32 %v1951_v56, %v2477_v46  ;;  %v997_v58 = vpop.f32.mrb[93].mxu1 }
 0x241   :  { %v998_v59 = vadd.f32 %v2477_v46, %v997_v58  ;;  %v1952_v60 = vpop.f32.mrb[94].mxu1  ;;  %2017 = vmatprep.mubr.msk.bf16.mxu0 %vm1147_vm2, %v1104_v55 }
 0x242   :  { %v1009_v61 = vadd.f32 %v1952_v60, %v2477_v46  ;;  %v1000_v62 = vpop.f32.mrb[95].mxu1  ;;  %2018 = vmatmul.mubr.msk.bf16.gmra.mrb[88].mxu0 %vm1147_vm2, %v1105_v54  ;;  %v1074_v0 = vmax.f32 %v1006_v57, 0.0 }
 0x243   :  { %v1001_v63 = vadd.f32 %v2477_v46, %v1000_v62  ;;  %v1072_v3 = vmax.f32 %v998_v59, 0.0 }
 0x244   :  { %v1075_v1 = vmax.f32 %v1009_v61, 0.0 }
 0x245   :  { %v1073_v4 = vmax.f32 %v1001_v63, 0.0 }
 0x246   :  { %v1107_v7 = vpack.c.bf16 %v1075_v1, %v1074_v0 }
 0x247   :  { %v1106_v9 = vpack.c.bf16 %v1073_v4, %v1072_v3 }
 0x249   :  { %2021 = vmatprep.mubr.msk.bf16.mxu0 %vm1147_vm2, %v1106_v9 }
 0x24a   :  { %2022 = vmatmul.mubr.msk.bf16.gmra.mrb[92].mxu0 %vm1147_vm2, %v1107_v7 }
 0x2a5   :  { %v1963_v12 = vpop.f32.mrb[32].mxu0 }
 0x2a6   :  { %v1287_v14 = vadd.f32 %v1963_v12, %v2578_v11  ;;  %v1278_v46 = vpop.f32.mrb[33].mxu0 }
 0x2a7   :  { %v1279_v15 = vadd.f32 %v2578_v11, %v1278_v46  ;;  %v1964_v16 = vpop.f32.mrb[34].mxu0 }
 0x2a8   :  { %1536 = vst.msk [vmem:[%s2907_s7 + $0x10] sm:$0xff] %vm1533_vm3, %v1287_v14  ;;  %v1290_v17 = vadd.f32 %v1964_v16, %v2578_v11  ;;  %v1281_v18 = vpop.f32.mrb[35].mxu0 }
 0x2a9   :  { %1534 = vst.msk [vmem:[%s2907_s7] sm:$0xff] %vm1533_vm3, %v1279_v15  ;;  %v1282_v19 = vadd.f32 %v2578_v11, %v1281_v18 }
 0x2aa   :  { %1537 = vst.msk [vmem:[%s2907_s7 + $0x18] sm:$0xff] %vm1533_vm3, %v1290_v17 }
 0x2ab   :  { %1535 = vst.msk [vmem:[%s2907_s7 + $0x8] sm:$0xff] %vm1533_vm3, %v1282_v19 }
 0x2ad   :  { %v1967_v20 = vpop.f32.mrb[36].mxu0 }
 0x2ae   :  { %v1303_v21 = vadd.f32 %v1967_v20, %v2578_v11  ;;  %v1294_v22 = vpop.f32.mrb[37].mxu0 }
 0x2af   :  { %v1295_v23 = vadd.f32 %v2578_v11, %v1294_v22  ;;  %v1968_v24 = vpop.f32.mrb[38].mxu0 }
 0x2b0   :  { %1540 = vst.msk [vmem:[%s2907_s7 + $0x30] sm:$0xff] %vm1533_vm3, %v1303_v21  ;;  %v1306_v25 = vadd.f32 %v1968_v24, %v2578_v11  ;;  %v1297_v26 = vpop.f32.mrb[39].mxu0 }
 0x2b1   :  { %1538 = vst.msk [vmem:[%s2907_s7 + $0x20] sm:$0xff] %vm1533_vm3, %v1295_v23  ;;  %v1298_v27 = vadd.f32 %v2578_v11, %v1297_v26 }
 0x2b2   :  { %1541 = vst.msk [vmem:[%s2907_s7 + $0x38] sm:$0xff] %vm1533_vm3, %v1306_v25 }
 0x2b3   :  { %1539 = vst.msk [vmem:[%s2907_s7 + $0x28] sm:$0xff] %vm1533_vm3, %v1298_v27 }
 0x2b5   :  { %v1971_v28 = vpop.f32.mrb[40].mxu0 }
 0x2b6   :  { %v1319_v29 = vadd.f32 %v1971_v28, %v2578_v11  ;;  %v1310_v30 = vpop.f32.mrb[41].mxu0 }
 0x2b7   :  { %v1311_v31 = vadd.f32 %v2578_v11, %v1310_v30  ;;  %v1972_v32 = vpop.f32.mrb[42].mxu0 }
 0x2b8   :  { %1544 = vst.msk [vmem:[%s2907_s7 + $0x50] sm:$0xff] %vm1533_vm3, %v1319_v29  ;;  %v1322_v33 = vadd.f32 %v1972_v32, %v2578_v11  ;;  %v1313_v36 = vpop.f32.mrb[43].mxu0 }
 0x2b9   :  { %1542 = vst.msk [vmem:[%s2907_s7 + $0x40] sm:$0xff] %vm1533_vm3, %v1311_v31  ;;  %v1314_v37 = vadd.f32 %v2578_v11, %v1313_v36 }
 0x2ba   :  { %1545 = vst.msk [vmem:[%s2907_s7 + $0x58] sm:$0xff] %vm1533_vm3, %v1322_v33 }
 0x2bb   :  { %1543 = vst.msk [vmem:[%s2907_s7 + $0x48] sm:$0xff] %vm1533_vm3, %v1314_v37 }
 0x2bd   :  { %v1975_v41 = vpop.f32.mrb[44].mxu0 }
 0x2be   :  { %v1335_v42 = vadd.f32 %v1975_v41, %v2578_v11  ;;  %v1326_v44 = vpop.f32.mrb[45].mxu0 }
 0x2bf   :  { %v1327_v45 = vadd.f32 %v2578_v11, %v1326_v44  ;;  %v1976_v10 = vpop.f32.mrb[46].mxu0 }
 0x2c0   :  { %1548 = vst.msk [vmem:[%s2907_s7 + $0x70] sm:$0xff] %vm1533_vm3, %v1335_v42  ;;  %v1338_v13 = vadd.f32 %v1976_v10, %v2578_v11  ;;  %v1329_v40 = vpop.f32.mrb[47].mxu0 }
 0x2c1   :  { %1546 = vst.msk [vmem:[%s2907_s7 + $0x60] sm:$0xff] %vm1533_vm3, %v1327_v45  ;;  %v1330_v43 = vadd.f32 %v2578_v11, %v1329_v40 }
 0x2c2   :  { %1549 = vst.msk [vmem:[%s2907_s7 + $0x78] sm:$0xff] %vm1533_vm3, %v1338_v13 }
 0x2c3   :  { %1547 = vst.msk [vmem:[%s2907_s7 + $0x68] sm:$0xff] %vm1533_vm3, %v1330_v43 }
 0x2c5   :  { %v1979_v5 = vpop.f32.mrb[48].mxu0 }
 0x2c6   :  { %v1351_v8 = vadd.f32 %v1979_v5, %v2578_v11  ;;  %v1342_v35 = vpop.f32.mrb[49].mxu0 }
 0x2c7   :  { %v1343_v38 = vadd.f32 %v2578_v11, %v1342_v35  ;;  %v1980_v2 = vpop.f32.mrb[50].mxu0 }
 0x2c8   :  { %1552 = vst.msk [vmem:[%s2907_s7 + $0x90] sm:$0xff] %vm1533_vm3, %v1351_v8  ;;  %v1354_v6 = vadd.f32 %v1980_v2, %v2578_v11  ;;  %v1345_v34 = vpop.f32.mrb[51].mxu0 }
 0x2c9   :  { %1550 = vst.msk [vmem:[%s2907_s7 + $0x80] sm:$0xff] %vm1533_vm3, %v1343_v38  ;;  %v1346_v39 = vadd.f32 %v2578_v11, %v1345_v34 }
 0x2ca   :  { %1553 = vst.msk [vmem:[%s2907_s7 + $0x98] sm:$0xff] %vm1533_vm3, %v1354_v6 }
 0x2cb   :  { %1551 = vst.msk [vmem:[%s2907_s7 + $0x88] sm:$0xff] %vm1533_vm3, %v1346_v39 }
 0x2cd   :  { %v1983_v47 = vpop.f32.mrb[52].mxu0 }
 0x2ce   :  { %v1367_v48 = vadd.f32 %v1983_v47, %v2578_v11  ;;  %v1358_v49 = vpop.f32.mrb[53].mxu0 }
 0x2cf   :  { %v1359_v50 = vadd.f32 %v2578_v11, %v1358_v49  ;;  %v1984_v51 = vpop.f32.mrb[54].mxu0 }
 0x2d0   :  { %1556 = vst.msk [vmem:[%s2907_s7 + $0xb0] sm:$0xff] %vm1533_vm3, %v1367_v48  ;;  %v1370_v52 = vadd.f32 %v1984_v51, %v2578_v11  ;;  %v1361_v53 = vpop.f32.mrb[55].mxu0 }
 0x2d1   :  { %1554 = vst.msk [vmem:[%s2907_s7 + $0xa0] sm:$0xff] %vm1533_vm3, %v1359_v50  ;;  %v1362_v54 = vadd.f32 %v2578_v11, %v1361_v53 }
 0x2d2   :  { %1557 = vst.msk [vmem:[%s2907_s7 + $0xb8] sm:$0xff] %vm1533_vm3, %v1370_v52 }
 0x2d3   :  { %1555 = vst.msk [vmem:[%s2907_s7 + $0xa8] sm:$0xff] %vm1533_vm3, %v1362_v54 }
 0x2d5   :  { %v1987_v55 = vpop.f32.mrb[56].mxu0 }
 0x2d6   :  { %v1383_v56 = vadd.f32 %v1987_v55, %v2578_v11  ;;  %v1374_v57 = vpop.f32.mrb[57].mxu0 }
 0x2d7   :  { %v1375_v58 = vadd.f32 %v2578_v11, %v1374_v57  ;;  %v1988_v59 = vpop.f32.mrb[58].mxu0 }
 0x2d8   :  { %1560 = vst.msk [vmem:[%s2907_s7 + $0xd0] sm:$0xff] %vm1533_vm3, %v1383_v56  ;;  %v1386_v60 = vadd.f32 %v1988_v59, %v2578_v11  ;;  %v1377_v61 = vpop.f32.mrb[59].mxu0 }
 0x2d9   :  { %1558 = vst.msk [vmem:[%s2907_s7 + $0xc0] sm:$0xff] %vm1533_vm3, %v1375_v58  ;;  %v1378_v62 = vadd.f32 %v2578_v11, %v1377_v61 }
 0x2da   :  { %1561 = vst.msk [vmem:[%s2907_s7 + $0xd8] sm:$0xff] %vm1533_vm3, %v1386_v60 }
 0x2db   :  { %1559 = vst.msk [vmem:[%s2907_s7 + $0xc8] sm:$0xff] %vm1533_vm3, %v1378_v62 }
 0x2dd   :  { %v1991_v63 = vpop.f32.mrb[60].mxu0 }
 0x2de   :  { %v1399_v0 = vadd.f32 %v1991_v63, %v2578_v11  ;;  %v1390_v1 = vpop.f32.mrb[61].mxu0 }
 0x2df   :  { %v1391_v3 = vadd.f32 %v2578_v11, %v1390_v1  ;;  %v1992_v4 = vpop.f32.mrb[62].mxu0 }
 0x2e0   :  { %1564 = vst.msk [vmem:[%s2907_s7 + $0xf0] sm:$0xff] %vm1533_vm3, %v1399_v0  ;;  %v1402_v7 = vadd.f32 %v1992_v4, %v2578_v11  ;;  %v1393_v9 = vpop.f32.mrb[63].mxu0 }
 0x2e1   :  { %1562 = vst.msk [vmem:[%s2907_s7 + $0xe0] sm:$0xff] %vm1533_vm3, %v1391_v3  ;;  %v1394_v12 = vadd.f32 %v2578_v11, %v1393_v9 }
 0x2e2   :  { %1565 = vst.msk [vmem:[%s2907_s7 + $0xf8] sm:$0xff] %vm1533_vm3, %v1402_v7 }
 0x2e3   :  { %1563 = vst.msk [vmem:[%s2907_s7 + $0xe8] sm:$0xff] %vm1533_vm3, %v1394_v12 }
 0x2e5   :  { %v1995_v14 = vpop.f32.mrb[64].mxu0 }
 0x2e6   :  { %v1415_v46 = vadd.f32 %v1995_v14, %v2578_v11  ;;  %v1406_v15 = vpop.f32.mrb[65].mxu0 }
 0x2e7   :  { %v1407_v16 = vadd.f32 %v2578_v11, %v1406_v15  ;;  %v1996_v17 = vpop.f32.mrb[66].mxu0 }
 0x2e8   :  { %1568 = vst.msk [vmem:[%s2907_s7 + $0x110] sm:$0xff] %vm1533_vm3, %v1415_v46  ;;  %v1418_v18 = vadd.f32 %v1996_v17, %v2578_v11  ;;  %v1409_v19 = vpop.f32.mrb[67].mxu0 }
 0x2e9   :  { %1566 = vst.msk [vmem:[%s2907_s7 + $0x100] sm:$0xff] %vm1533_vm3, %v1407_v16  ;;  %v1410_v20 = vadd.f32 %v2578_v11, %v1409_v19 }
 0x2ea   :  { %1569 = vst.msk [vmem:[%s2907_s7 + $0x118] sm:$0xff] %vm1533_vm3, %v1418_v18 }
 0x2eb   :  { %1567 = vst.msk [vmem:[%s2907_s7 + $0x108] sm:$0xff] %vm1533_vm3, %v1410_v20 }
 0x2ed   :  { %v1999_v21 = vpop.f32.mrb[68].mxu0 }
 0x2ee   :  { %v1431_v22 = vadd.f32 %v1999_v21, %v2578_v11  ;;  %v1422_v23 = vpop.f32.mrb[69].mxu0 }
 0x2ef   :  { %v1423_v24 = vadd.f32 %v2578_v11, %v1422_v23  ;;  %v2000_v25 = vpop.f32.mrb[70].mxu0 }
 0x2f0   :  { %1572 = vst.msk [vmem:[%s2907_s7 + $0x130] sm:$0xff] %vm1533_vm3, %v1431_v22  ;;  %v1434_v26 = vadd.f32 %v2000_v25, %v2578_v11  ;;  %v1425_v27 = vpop.f32.mrb[71].mxu0 }
 0x2f1   :  { %1570 = vst.msk [vmem:[%s2907_s7 + $0x120] sm:$0xff] %vm1533_vm3, %v1423_v24  ;;  %v1426_v28 = vadd.f32 %v2578_v11, %v1425_v27 }
 0x2f2   :  { %1573 = vst.msk [vmem:[%s2907_s7 + $0x138] sm:$0xff] %vm1533_vm3, %v1434_v26 }
 0x2f3   :  { %1571 = vst.msk [vmem:[%s2907_s7 + $0x128] sm:$0xff] %vm1533_vm3, %v1426_v28 }
 0x2f5   :  { %v2003_v29 = vpop.f32.mrb[72].mxu0 }
 0x2f6   :  { %v1447_v30 = vadd.f32 %v2003_v29, %v2578_v11  ;;  %v1438_v31 = vpop.f32.mrb[73].mxu0 }
 0x2f7   :  { %v1439_v32 = vadd.f32 %v2578_v11, %v1438_v31  ;;  %v2004_v33 = vpop.f32.mrb[74].mxu0 }
 0x2f8   :  { %1576 = vst.msk [vmem:[%s2907_s7 + $0x150] sm:$0xff] %vm1533_vm3, %v1447_v30  ;;  %v1450_v36 = vadd.f32 %v2004_v33, %v2578_v11  ;;  %v1441_v37 = vpop.f32.mrb[75].mxu0 }
 0x2f9   :  { %1574 = vst.msk [vmem:[%s2907_s7 + $0x140] sm:$0xff] %vm1533_vm3, %v1439_v32  ;;  %v1442_v41 = vadd.f32 %v2578_v11, %v1441_v37 }
 0x2fa   :  { %1577 = vst.msk [vmem:[%s2907_s7 + $0x158] sm:$0xff] %vm1533_vm3, %v1450_v36 }
 0x2fb   :  { %1575 = vst.msk [vmem:[%s2907_s7 + $0x148] sm:$0xff] %vm1533_vm3, %v1442_v41 }
 0x2fd   :  { %v2007_v42 = vpop.f32.mrb[76].mxu0 }
 0x2fe   :  { %v1463_v44 = vadd.f32 %v2007_v42, %v2578_v11  ;;  %v1454_v45 = vpop.f32.mrb[77].mxu0 }
 0x2ff   :  { %v1455_v10 = vadd.f32 %v2578_v11, %v1454_v45  ;;  %v2008_v13 = vpop.f32.mrb[78].mxu0 }
 0x300   :  { %1580 = vst.msk [vmem:[%s2907_s7 + $0x170] sm:$0xff] %vm1533_vm3, %v1463_v44  ;;  %v1466_v40 = vadd.f32 %v2008_v13, %v2578_v11  ;;  %v1457_v43 = vpop.f32.mrb[79].mxu0 }
 0x301   :  { %1578 = vst.msk [vmem:[%s2907_s7 + $0x160] sm:$0xff] %vm1533_vm3, %v1455_v10  ;;  %v1458_v5 = vadd.f32 %v2578_v11, %v1457_v43 }
 0x302   :  { %1581 = vst.msk [vmem:[%s2907_s7 + $0x178] sm:$0xff] %vm1533_vm3, %v1466_v40 }
 0x303   :  { %1579 = vst.msk [vmem:[%s2907_s7 + $0x168] sm:$0xff] %vm1533_vm3, %v1458_v5 }
 0x305   :  { %v2011_v8 = vpop.f32.mrb[80].mxu0 }
 0x306   :  { %v1479_v35 = vadd.f32 %v2011_v8, %v2578_v11  ;;  %v1470_v38 = vpop.f32.mrb[81].mxu0 }
 0x307   :  { %v1471_v2 = vadd.f32 %v2578_v11, %v1470_v38  ;;  %v2012_v6 = vpop.f32.mrb[82].mxu0 }
 0x308   :  { %1584 = vst.msk [vmem:[%s2907_s7 + $0x190] sm:$0xff] %vm1533_vm3, %v1479_v35  ;;  %v1482_v34 = vadd.f32 %v2012_v6, %v2578_v11  ;;  %v1473_v39 = vpop.f32.mrb[83].mxu0 }
 0x309   :  { %1582 = vst.msk [vmem:[%s2907_s7 + $0x180] sm:$0xff] %vm1533_vm3, %v1471_v2  ;;  %v1474_v47 = vadd.f32 %v2578_v11, %v1473_v39 }
 0x30a   :  { %1585 = vst.msk [vmem:[%s2907_s7 + $0x198] sm:$0xff] %vm1533_vm3, %v1482_v34 }
 0x30b   :  { %1583 = vst.msk [vmem:[%s2907_s7 + $0x188] sm:$0xff] %vm1533_vm3, %v1474_v47 }
 0x30d   :  { %v2015_v48 = vpop.f32.mrb[84].mxu0 }
 0x30e   :  { %v1495_v49 = vadd.f32 %v2015_v48, %v2578_v11  ;;  %v1486_v50 = vpop.f32.mrb[85].mxu0 }
 0x30f   :  { %v1487_v51 = vadd.f32 %v2578_v11, %v1486_v50  ;;  %v2016_v52 = vpop.f32.mrb[86].mxu0 }
 0x310   :  { %1588 = vst.msk [vmem:[%s2907_s7 + $0x1b0] sm:$0xff] %vm1533_vm3, %v1495_v49  ;;  %v1498_v53 = vadd.f32 %v2016_v52, %v2578_v11  ;;  %v1489_v54 = vpop.f32.mrb[87].mxu0 }
 0x311   :  { %1586 = vst.msk [vmem:[%s2907_s7 + $0x1a0] sm:$0xff] %vm1533_vm3, %v1487_v51  ;;  %v1490_v55 = vadd.f32 %v2578_v11, %v1489_v54 }
 0x312   :  { %1589 = vst.msk [vmem:[%s2907_s7 + $0x1b8] sm:$0xff] %vm1533_vm3, %v1498_v53 }
 0x313   :  { %1587 = vst.msk [vmem:[%s2907_s7 + $0x1a8] sm:$0xff] %vm1533_vm3, %v1490_v55 }
 0x315   :  { %v2019_v56 = vpop.f32.mrb[88].mxu0 }
 0x316   :  { %v1511_v57 = vadd.f32 %v2019_v56, %v2578_v11  ;;  %v1502_v58 = vpop.f32.mrb[89].mxu0 }
 0x317   :  { %v1503_v59 = vadd.f32 %v2578_v11, %v1502_v58  ;;  %v2020_v60 = vpop.f32.mrb[90].mxu0 }
 0x318   :  { %1592 = vst.msk [vmem:[%s2907_s7 + $0x1d0] sm:$0xff] %vm1533_vm3, %v1511_v57  ;;  %v1514_v61 = vadd.f32 %v2020_v60, %v2578_v11  ;;  %v1505_v62 = vpop.f32.mrb[91].mxu0 }
 0x319   :  { %1590 = vst.msk [vmem:[%s2907_s7 + $0x1c0] sm:$0xff] %vm1533_vm3, %v1503_v59  ;;  %v1506_v63 = vadd.f32 %v2578_v11, %v1505_v62 }
 0x31a   :  { %1593 = vst.msk [vmem:[%s2907_s7 + $0x1d8] sm:$0xff] %vm1533_vm3, %v1514_v61 }
 0x31b   :  { %1591 = vst.msk [vmem:[%s2907_s7 + $0x1c8] sm:$0xff] %vm1533_vm3, %v1506_v63 }
 0x31d   :  { %v2023_v0 = vpop.f32.mrb[92].mxu0 }
 0x31e   :  { %v1527_v1 = vadd.f32 %v2023_v0, %v2578_v11  ;;  %v1518_v3 = vpop.f32.mrb[93].mxu0 }
 0x31f   :  { %v1519_v4 = vadd.f32 %v2578_v11, %v1518_v3  ;;  %v2024_v7 = vpop.f32.mrb[94].mxu0 }
 0x320   :  { %1596 = vst.msk [vmem:[%s2907_s7 + $0x1f0] sm:$0xff] %vm1533_vm3, %v1527_v1  ;;  %v1530_v9 = vadd.f32 %v2024_v7, %v2578_v11  ;;  %v1521_v12 = vpop.f32.mrb[95].mxu0 }
 0x321   :  { %1594 = vst.msk [vmem:[%s2907_s7 + $0x1e0] sm:$0xff] %vm1533_vm3, %v1519_v4  ;;  %v1522_v14 = vadd.f32 %v2578_v11, %v1521_v12 }
 0x322   :  { %1597 = vst.msk [vmem:[%s2907_s7 + $0x1f8] sm:$0xff] %vm1533_vm3, %v1530_v9 }
 0x323   :  { %1595 = vst.msk [vmem:[%s2907_s7 + $0x1e8] sm:$0xff] %vm1533_vm3, %v1522_v14 }

</bundles_post_ra>
